<compile_context>
chip_gen: v7x
topology: tpu7x:2x2x1
jax: 0.10.0
libtpu: 0.0.40
codegen_flags: <defaults>
</compile_context>

<pallas_src>
import functools
import math

import jax
import jax.numpy as jnp
from jax.experimental import pallas as pl
from jax.experimental.pallas import tpu as pltpu
from jax.scipy.stats import norm as _jsp_norm  # reference check only

_INV_SQRT2 = 1.0 / math.sqrt(2.0)


# ----------------------------------------------------------------------------
# Synthetic "PerformanceTransformer": get_scores(p) = p, discretize = 0.1 grid.
# ----------------------------------------------------------------------------
def _discretize(s):
    return jnp.round(s * 10.0) / 10.0


# ----------------------------------------------------------------------------
# erfc: Numerical-Recipes approximation (|rel err| < 1.2e-7).  Exact divide so
# the advertised accuracy holds (per the review's correctness concern).
# ----------------------------------------------------------------------------
def _erfc_approx(x):
    t = 1.0 / (1.0 + 0.5 * jnp.abs(x))
    poly = -1.26551223 + t * (1.00002368 + t * (0.37409196 + t * (0.09678418 +
           t * (-0.18628806 + t * (0.27886807 + t * (-1.13520398 + t * (1.48851587 +
           t * (-0.82215223 + t * 0.17087277))))))))
    ans = t * jnp.exp(-x * x + poly)
    return jnp.where(x >= 0.0, ans, 2.0 - ans)


# ----------------------------------------------------------------------------
# Fused kernel: one grid step per TB-sample tile, samples live on LANES.
# ----------------------------------------------------------------------------
def _ssi_loss_kernel(idx_ref,      # VMEM (1, 1, TB) int32  sample indices
                     scores_ref,   # VMEM (1, TB)   f32     batch scores
                     tbl_ref,      # VMEM (N, C, 1) f32     combined lookup (resident)
                     slkp_ref,     # VMEM (N+1,1,1) f32     scores_lookup (resident)
                     minloc_ref,   # SMEM (1, 1)    f32     batch-global min(loc)
                     out_ref,      # VMEM (1, TB)   f32     disjoint lane-dense tile
                     *, P):
    N = tbl_ref.shape[0]
    Nlk = slkp_ref.shape[0]
    TB = out_ref.shape[1]
    PP = P * P

    # --- first-level gather: per-sample row of the combined table (exact) ----
    idx = idx_ref[...]                                                    # (1,1,TB)
    oh = jax.lax.broadcasted_iota(jnp.int32, (N, 1, TB), 0) == idx        # (N,1,TB)
    g = jnp.sum(oh.astype(jnp.float32) * tbl_ref[...], axis=0)            # (C, TB)

    w_flat = g[0:PP, :]                          # (P*P, TB) row k=i*P+j -> W[idx,i,j]
    nbr = g[PP:PP + P, :]                        # (P, TB)   neighbor idxs (exact ints)
    loc = g[PP + P:PP + P + 1, :]                # (1, TB)
    inv_scale = g[PP + P + 1:PP + P + 2, :]      # (1, TB)   1/std

    # --- second-level gather: neighborhood scores from scores_lookup ---------
    nbr_i = nbr.astype(jnp.int32)                                          # (P, TB)
    oh2 = (jax.lax.broadcasted_iota(jnp.int32, (Nlk, P, TB), 0)
           == nbr_i[None, :, :])                                           # (Nlk,P,TB)
    ns = jnp.sum(oh2.astype(jnp.float32) * slkp_ref[...], axis=0)          # (P, TB)

    # neighborhood_scores[:, 0] = scores  (iota + where, no scatter)
    row0 = jax.lax.broadcasted_iota(jnp.int32, (P, TB), 0) == 0
    ns = jnp.where(row0, scores_ref[...], ns)                              # (P, TB)

    # --- Moran's-I numerator  x^T W x  per sample, flattened (no transposes) -
    x = ns - jnp.mean(ns, axis=0, keepdims=True)                           # (P, TB)
    xi = jnp.concatenate(
        [jnp.broadcast_to(x[i:i + 1, :], (P, TB)) for i in range(P)], axis=0)  # (P*P,TB)
    xj = jnp.concatenate([x] * P, axis=0)                                  # (P*P, TB)
    moran = jnp.sum(w_flat * xi * xj, axis=0, keepdims=True)               # (1, TB)

    # --- reflected left tail (batch-global min(loc) quirk), clamp, CDF, -log -
    min_loc = minloc_ref[0, 0]
    left = jnp.minimum(moran, 2.0 * min_loc - moran)                       # (1, TB)
    clamped = jnp.clip((left - loc) * inv_scale, -5.0, 0.0)                # (1, TB)
    cdf = 0.5 * _erfc_approx(-clamped * _INV_SQRT2)                        # Phi(clamped)
    out_ref[...] = -jnp.log(2.0 * cdf + 1e-12)


def _ssi_loss_pallas(idx, scores, comb_tbl, slkp3, mean_lookup, P):
    B = int(idx.shape[0])
    N, C, _ = comb_tbl.shape
    Nlk = slkp3.shape[0]

    # Batch tile: full lane width when the batch allows it; padded samples are
    # computed on garbage-free (idx=0) data and dropped on return.
    TB = 8 if B <= 8 else 128
    B_pad = ((B + TB - 1) // TB) * TB
    grid = (B_pad // TB,)

    idx_i = idx.astype(jnp.int32)
    idx_pad = jnp.zeros((1, 1, B_pad), jnp.int32).at[0, 0, :B].set(idx_i)
    scores_pad = jnp.zeros((1, B_pad), jnp.float32).at[0, :B].set(
        scores.astype(jnp.float32))
    # Exact precompute of the torch broadcasting quirk (batch-global min loc).
    min_loc = jnp.min(mean_lookup[idx_i]).reshape(1, 1).astype(jnp.float32)

    out = pl.pallas_call(
        functools.partial(_ssi_loss_kernel, P=P),
        out_shape=jax.ShapeDtypeStruct((1, B_pad), jnp.float32),
        grid=grid,
        in_specs=[
            pl.BlockSpec((1, 1, TB), lambda i: (0, 0, i)),            # idx tile
            pl.BlockSpec((1, TB), lambda i: (0, i)),                  # score tile
            pl.BlockSpec((N, C, 1), lambda i: (0, 0, 0)),             # combined table (resident)
            pl.BlockSpec((Nlk, 1, 1), lambda i: (0, 0, 0)),           # scores_lookup (resident)
            pl.BlockSpec(memory_space=pltpu.MemorySpace.SMEM),        # min(loc) scalar
        ],
        out_specs=pl.BlockSpec((1, TB), lambda i: (0, i)),            # disjoint lane-dense tile
        compiler_params=pltpu.CompilerParams(
            dimension_semantics=("parallel",)),                       # batch axis is parallel
    )(idx_pad, scores_pad, comb_tbl, slkp3, min_loc)
    return out[0, :B]


# ----------------------------------------------------------------------------
# MarkedSSILoss: module state (lookups, laid out once at init) + forward.
# Partitioner / PerformanceTransformer / SSI_distribution_estimator are
# replaced by deterministic synthetic state (they only fill the lookups).
# ----------------------------------------------------------------------------
class MarkedSSILossPallas:
    def __init__(self, N, n_cls, n_neighbor_points, key):
        self.N = N
        self.n_cls = n_cls
        self.P = n_neighbor_points
        P = self.P

        k1, k2, k3, k4, k5, k6 = jax.random.split(key, 6)

        # scores_lookup: (N+1,), last entry = discretized background score.
        background_prob = jnp.ones((1,), jnp.float32) * (1.0 / n_cls)
        lookup = _discretize(jax.random.uniform(k1, (N,), jnp.float32))
        self.scores_lookup = jnp.concatenate(
            [lookup, _discretize(background_prob)], axis=0)

        # neighborhood_scores_idx_lookup: (N, P); -1 marks a background point.
        nbr = jax.random.randint(k2, (N, P), 0, N)
        bg_mask = jax.random.bernoulli(k3, 0.3, (N, P))
        self.neighborhood_scores_idx_lookup = jnp.where(bg_mask, -1, nbr).astype(jnp.int32)

        # weight_matrix_lookup: (N, P, P), zero diagonal, row-normalized.
        wm = jax.random.uniform(k4, (N, P, P), jnp.float32)
        wm = wm * (1.0 - jnp.eye(P, dtype=jnp.float32)[None])
        wm = wm / jnp.sum(wm, axis=-1, keepdims=True)
        self.weight_matrix_lookup = wm

        # mean_lookup / std_lookup: (N,)
        self.mean_lookup = jax.random.uniform(k5, (N,), jnp.float32) * 0.5
        self.std_lookup = jax.random.uniform(k6, (N,), jnp.float32) * 0.5 + 0.1

        # --- kernel-side layouts (built once; fully VMEM-resident at run) ----
        # combined table rows (per table entry n):
        #   [0, P*P)        flattened weight matrix  (k = i*P + j)
        #   [P*P, P*P+P)    neighbor idxs, -1 remapped to N (background slot)
        #   P*P+P           loc   (= mean_lookup)
        #   P*P+P+1         1/std (stored reciprocal -> multiply in kernel)
        nbr_remap = jnp.where(self.neighborhood_scores_idx_lookup < 0, N,
                              self.neighborhood_scores_idx_lookup).astype(jnp.float32)
        comb = jnp.concatenate([
            wm.reshape(N, P * P),
            nbr_remap,
            self.mean_lookup[:, None],
            (1.0 / self.std_lookup)[:, None],
        ], axis=1)                                   # (N, C)
        self.C = P * P + P + 2
        self.comb_tbl = comb.reshape(N, self.C, 1)   # (N, C, 1) kernel layout
        self.slkp3 = self.scores_lookup.reshape(N + 1, 1, 1)

    def forward(self, idx, scores):
        """idx: (B,) int32 sample indices; scores: (B,) discretized scores."""
        return _ssi_loss_pallas(idx, scores, self.comb_tbl, self.slkp3,
                                self.mean_lookup, self.P)


# ----------------------------------------------------------------------------
# Pure-JAX reference (mirrors the PyTorch forward incl. the broadcast quirk).
# ----------------------------------------------------------------------------
def _reference_loss(mod, idx, scores):
    nbr = mod.neighborhood_scores_idx_lookup[idx]
    nbr = jnp.where(nbr < 0, mod.scores_lookup.shape[0] - 1, nbr)
    ns = mod.scores_lookup[nbr]
    ns = ns.at[:, 0].set(scores)
    x = ns - jnp.mean(ns, axis=1, keepdims=True)
    w = mod.weight_matrix_lookup[idx]
    y = jnp.einsum("bij,bj->bi", w, x, precision=jax.lax.Precision.HIGHEST)
    moran = jnp.sum(x * y, axis=1, keepdims=True)                 # (B, 1)
    locs = mod.mean_lookup[idx]
    scales = mod.std_lookup[idx]
    refl = 2.0 * locs[None, :] - moran                            # (B, B) broadcast quirk
    left = jnp.minimum(moran[:, 0], jnp.min(refl, axis=1))        # (B,)
    clamped = jnp.clip((left - locs) / scales, -5.0, 0.0)
    cdf = _jsp_norm.cdf(clamped)
    return -jnp.log(2.0 * cdf + 1e-12)


if __name__ == "__main__":
    N, n_cls, P, B = 16, 4, 8, 4

    key = jax.random.PRNGKey(0)
    k_state, k_scores = jax.random.split(key)

    loss_mod = MarkedSSILossPallas(N=N, n_cls=n_cls, n_neighbor_points=P, key=k_state)

    idx = jnp.array([0, 3, 7, 12], dtype=jnp.int32)                              # (B,)
    batch_scores = _discretize(jax.random.uniform(k_scores, (B,), jnp.float32))  # (B,)

    out = loss_mod.forward(idx, batch_scores)
    out = jax.block_until_ready(out)

    assert out.shape == (B,)
    assert bool(jnp.all(jnp.isfinite(out)))

    ref = _reference_loss(loss_mod, idx, batch_scores)
    assert bool(jnp.allclose(out, ref, rtol=5e-3, atol=5e-3)), (out, ref)

    print("KERNEL_OK")
</pallas_src>

<mosaic_0001>
module attributes {stable_mosaic.version = 11 : i64} {
  func.func @_ssi_loss_kernel(%arg0: i32, %arg1: memref<1x1x8xi32, #tpu.memory_space<vmem>>, %arg2: memref<1x8xf32, #tpu.memory_space<vmem>>, %arg3: memref<16x74x1xf32, #tpu.memory_space<vmem>>, %arg4: memref<17x1x1xf32, #tpu.memory_space<vmem>>, %arg5: memref<1x1xf32, #tpu.memory_space<smem>>, %arg6: memref<1x8xf32, #tpu.memory_space<vmem>>) attributes {dimension_semantics = [#tpu.dimension_semantics<parallel>], iteration_bounds = array<i64: 1>, scalar_prefetch = 0 : i64, scratch_operands = 0 : i64, tpu.core_type = #tpu.core_type<tc>, window_params = [{transform_indices = @transform_0, window_bounds = array<i64: 1, 1, 8>}, {transform_indices = @transform_1, window_bounds = array<i64: 1, 8>}, {pipeline_mode = #tpu.pipeline_mode<synchronous>, transform_indices = @transform_2, window_bounds = array<i64: 16, 74, 1>}, {pipeline_mode = #tpu.pipeline_mode<synchronous>, transform_indices = @transform_3, window_bounds = array<i64: 17, 1, 1>}, {transform_indices = @transform_4, window_bounds = array<i64: 1, 1>}, {transform_indices = @transform_5, window_bounds = array<i64: 1, 8>}]} {
    %c0 = arith.constant 0 : index
    %c0_0 = arith.constant 0 : index
    %c0_1 = arith.constant 0 : index
    %0 = vector.load %arg1[%c0, %c0_0, %c0_1] : memref<1x1x8xi32, #tpu.memory_space<vmem>>, vector<1x1x8xi32>
    %1 = tpu.iota {dimensions = array<i32: 0>} : vector<16x1x8xi32>
    %2 = vector.broadcast %0 : vector<1x1x8xi32> to vector<16x1x8xi32>
    %3 = arith.cmpi eq, %1, %2 : vector<16x1x8xi32>
    %4 = arith.extui %3 : vector<16x1x8xi1> to vector<16x1x8xi32>
    %5 = arith.sitofp %4 : vector<16x1x8xi32> to vector<16x1x8xf32>
    %c0_2 = arith.constant 0 : index
    %c0_3 = arith.constant 0 : index
    %c0_4 = arith.constant 0 : index
    %6 = vector.load %arg3[%c0_2, %c0_3, %c0_4] : memref<16x74x1xf32, #tpu.memory_space<vmem>>, vector<16x74x1xf32>
    %7 = vector.broadcast %5 : vector<16x1x8xf32> to vector<16x74x8xf32>
    %8 = vector.broadcast %6 : vector<16x74x1xf32> to vector<16x74x8xf32>
    %9 = arith.mulf %7, %8 : vector<16x74x8xf32>
    %cst = arith.constant dense<0.000000e+00> : vector<74x8xf32>
    %10 = vector.multi_reduction <add>, %9, %cst [0] : vector<16x74x8xf32> to vector<74x8xf32>
    %11 = vector.extract_strided_slice %10 {offsets = [0, 0], sizes = [64, 8], strides = [1, 1]} : vector<74x8xf32> to vector<64x8xf32>
    %12 = vector.extract_strided_slice %10 {offsets = [64, 0], sizes = [8, 8], strides = [1, 1]} : vector<74x8xf32> to vector<8x8xf32>
    %13 = vector.extract_strided_slice %10 {offsets = [72, 0], sizes = [1, 8], strides = [1, 1]} : vector<74x8xf32> to vector<1x8xf32>
    %14 = vector.extract_strided_slice %10 {offsets = [73, 0], sizes = [1, 8], strides = [1, 1]} : vector<74x8xf32> to vector<1x8xf32>
    %15 = arith.fptosi %12 : vector<8x8xf32> to vector<8x8xi32>
    %16 = tpu.iota {dimensions = array<i32: 0>} : vector<17x8x8xi32>
    %17 = vector.shape_cast %15 : vector<8x8xi32> to vector<1x8x8xi32>
    %18 = vector.broadcast %17 : vector<1x8x8xi32> to vector<17x8x8xi32>
    %19 = arith.cmpi eq, %16, %18 : vector<17x8x8xi32>
    %20 = arith.extui %19 : vector<17x8x8xi1> to vector<17x8x8xi32>
    %21 = arith.sitofp %20 : vector<17x8x8xi32> to vector<17x8x8xf32>
    %c0_5 = arith.constant 0 : index
    %c0_6 = arith.constant 0 : index
    %c0_7 = arith.constant 0 : index
    %22 = vector.load %arg4[%c0_5, %c0_6, %c0_7] : memref<17x1x1xf32, #tpu.memory_space<vmem>>, vector<17x1x1xf32>
    %23 = vector.broadcast %22 : vector<17x1x1xf32> to vector<17x8x8xf32>
    %24 = arith.mulf %21, %23 : vector<17x8x8xf32>
    %cst_8 = arith.constant dense<0.000000e+00> : vector<8x8xf32>
    %25 = vector.multi_reduction <add>, %24, %cst_8 [0] : vector<17x8x8xf32> to vector<8x8xf32>
    %26 = tpu.iota {dimensions = array<i32: 0>} : vector<8x8xi32>
    %c0_i32 = arith.constant 0 : i32
    %27 = vector.broadcast %c0_i32 : i32 to vector<8x8xi32>
    %28 = arith.cmpi eq, %26, %27 : vector<8x8xi32>
    %c0_9 = arith.constant 0 : index
    %c0_10 = arith.constant 0 : index
    %29 = vector.load %arg2[%c0_9, %c0_10] : memref<1x8xf32, #tpu.memory_space<vmem>>, vector<1x8xf32>
    %30 = vector.shape_cast %29 : vector<1x8xf32> to vector<1x8xf32>
    %31 = vector.broadcast %30 : vector<1x8xf32> to vector<8x8xf32>
    %32 = arith.select %28, %31, %25 : vector<8x8xi1>, vector<8x8xf32>
    %cst_11 = arith.constant dense<0.000000e+00> : vector<8xf32>
    %33 = vector.multi_reduction <add>, %32, %cst_11 [0] : vector<8x8xf32> to vector<8xf32>
    %34 = vector.shape_cast %33 : vector<8xf32> to vector<1x8xf32>
    %cst_12 = arith.constant 8.000000e+00 : f32
    %35 = vector.broadcast %cst_12 : f32 to vector<1x8xf32>
    %36 = arith.divf %34, %35 : vector<1x8xf32>
    %37 = vector.broadcast %36 : vector<1x8xf32> to vector<8x8xf32>
    %38 = arith.subf %32, %37 : vector<8x8xf32>
    %39 = vector.extract_strided_slice %38 {offsets = [0, 0], sizes = [1, 8], strides = [1, 1]} : vector<8x8xf32> to vector<1x8xf32>
    %40 = vector.shape_cast %39 : vector<1x8xf32> to vector<1x8xf32>
    %41 = vector.broadcast %40 : vector<1x8xf32> to vector<8x8xf32>
    %42 = vector.extract_strided_slice %38 {offsets = [1, 0], sizes = [1, 8], strides = [1, 1]} : vector<8x8xf32> to vector<1x8xf32>
    %43 = vector.shape_cast %42 : vector<1x8xf32> to vector<1x8xf32>
    %44 = vector.broadcast %43 : vector<1x8xf32> to vector<8x8xf32>
    %45 = vector.extract_strided_slice %38 {offsets = [2, 0], sizes = [1, 8], strides = [1, 1]} : vector<8x8xf32> to vector<1x8xf32>
    %46 = vector.shape_cast %45 : vector<1x8xf32> to vector<1x8xf32>
    %47 = vector.broadcast %46 : vector<1x8xf32> to vector<8x8xf32>
    %48 = vector.extract_strided_slice %38 {offsets = [3, 0], sizes = [1, 8], strides = [1, 1]} : vector<8x8xf32> to vector<1x8xf32>
    %49 = vector.shape_cast %48 : vector<1x8xf32> to vector<1x8xf32>
    %50 = vector.broadcast %49 : vector<1x8xf32> to vector<8x8xf32>
    %51 = vector.extract_strided_slice %38 {offsets = [4, 0], sizes = [1, 8], strides = [1, 1]} : vector<8x8xf32> to vector<1x8xf32>
    %52 = vector.shape_cast %51 : vector<1x8xf32> to vector<1x8xf32>
    %53 = vector.broadcast %52 : vector<1x8xf32> to vector<8x8xf32>
    %54 = vector.extract_strided_slice %38 {offsets = [5, 0], sizes = [1, 8], strides = [1, 1]} : vector<8x8xf32> to vector<1x8xf32>
    %55 = vector.shape_cast %54 : vector<1x8xf32> to vector<1x8xf32>
    %56 = vector.broadcast %55 : vector<1x8xf32> to vector<8x8xf32>
    %57 = vector.extract_strided_slice %38 {offsets = [6, 0], sizes = [1, 8], strides = [1, 1]} : vector<8x8xf32> to vector<1x8xf32>
    %58 = vector.shape_cast %57 : vector<1x8xf32> to vector<1x8xf32>
    %59 = vector.broadcast %58 : vector<1x8xf32> to vector<8x8xf32>
    %60 = vector.extract_strided_slice %38 {offsets = [7, 0], sizes = [1, 8], strides = [1, 1]} : vector<8x8xf32> to vector<1x8xf32>
    %61 = vector.shape_cast %60 : vector<1x8xf32> to vector<1x8xf32>
    %62 = vector.broadcast %61 : vector<1x8xf32> to vector<8x8xf32>
    %63 = tpu.concatenate %41, %44, %47, %50, %53, %56, %59, %62 in 0 : vector<8x8xf32>, vector<8x8xf32>, vector<8x8xf32>, vector<8x8xf32>, vector<8x8xf32>, vector<8x8xf32>, vector<8x8xf32>, vector<8x8xf32> -> vector<64x8xf32>
    %64 = tpu.concatenate %38, %38, %38, %38, %38, %38, %38, %38 in 0 : vector<8x8xf32>, vector<8x8xf32>, vector<8x8xf32>, vector<8x8xf32>, vector<8x8xf32>, vector<8x8xf32>, vector<8x8xf32>, vector<8x8xf32> -> vector<64x8xf32>
    %65 = arith.mulf %11, %63 : vector<64x8xf32>
    %66 = arith.mulf %65, %64 : vector<64x8xf32>
    %cst_13 = arith.constant dense<0.000000e+00> : vector<8xf32>
    %67 = vector.multi_reduction <add>, %66, %cst_13 [0] : vector<64x8xf32> to vector<8xf32>
    %68 = vector.shape_cast %67 : vector<8xf32> to vector<1x8xf32>
    %c0_14 = arith.constant 0 : index
    %c0_15 = arith.constant 0 : index
    %69 = memref.load %arg5[%c0_14, %c0_15] : memref<1x1xf32, #tpu.memory_space<smem>>
    %cst_16 = arith.constant 2.000000e+00 : f32
    %70 = arith.mulf %cst_16, %69 : f32
    %71 = vector.broadcast %70 : f32 to vector<1x8xf32>
    %72 = arith.subf %71, %68 : vector<1x8xf32>
    %73 = arith.minimumf %68, %72 : vector<1x8xf32>
    %74 = arith.subf %73, %13 : vector<1x8xf32>
    %75 = arith.mulf %74, %14 : vector<1x8xf32>
    %cst_17 = arith.constant -5.000000e+00 : f32
    %cst_18 = arith.constant 0.000000e+00 : f32
    %76 = vector.broadcast %cst_17 : f32 to vector<1x8xf32>
    %77 = arith.maximumf %76, %75 : vector<1x8xf32>
    %78 = vector.broadcast %cst_18 : f32 to vector<1x8xf32>
    %79 = arith.minimumf %78, %77 : vector<1x8xf32>
    %cst_19 = arith.constant 0.000000e+00 : f32
    %80 = vector.broadcast %cst_19 : f32 to vector<1x8xf32>
    %81 = arith.subf %80, %79 : vector<1x8xf32>
    %cst_20 = arith.constant 0.707106769 : f32
    %82 = vector.broadcast %cst_20 : f32 to vector<1x8xf32>
    %83 = arith.mulf %81, %82 : vector<1x8xf32>
    %84 = math.absf %83 : vector<1x8xf32>
    %cst_21 = arith.constant 5.000000e-01 : f32
    %85 = vector.broadcast %cst_21 : f32 to vector<1x8xf32>
    %86 = arith.mulf %85, %84 : vector<1x8xf32>
    %cst_22 = arith.constant 1.000000e+00 : f32
    %87 = vector.broadcast %cst_22 : f32 to vector<1x8xf32>
    %88 = arith.addf %87, %86 : vector<1x8xf32>
    %cst_23 = arith.constant 1.000000e+00 : f32
    %89 = vector.broadcast %cst_23 : f32 to vector<1x8xf32>
    %90 = arith.divf %89, %88 : vector<1x8xf32>
    %cst_24 = arith.constant 0.170872763 : f32
    %91 = vector.broadcast %cst_24 : f32 to vector<1x8xf32>
    %92 = arith.mulf %90, %91 : vector<1x8xf32>
    %cst_25 = arith.constant -0.822152256 : f32
    %93 = vector.broadcast %cst_25 : f32 to vector<1x8xf32>
    %94 = arith.addf %93, %92 : vector<1x8xf32>
    %95 = arith.mulf %90, %94 : vector<1x8xf32>
    %cst_26 = arith.constant 1.48851585 : f32
    %96 = vector.broadcast %cst_26 : f32 to vector<1x8xf32>
    %97 = arith.addf %96, %95 : vector<1x8xf32>
    %98 = arith.mulf %90, %97 : vector<1x8xf32>
    %cst_27 = arith.constant -1.13520396 : f32
    %99 = vector.broadcast %cst_27 : f32 to vector<1x8xf32>
    %100 = arith.addf %99, %98 : vector<1x8xf32>
    %101 = arith.mulf %90, %100 : vector<1x8xf32>
    %cst_28 = arith.constant 0.278868079 : f32
    %102 = vector.broadcast %cst_28 : f32 to vector<1x8xf32>
    %103 = arith.addf %102, %101 : vector<1x8xf32>
    %104 = arith.mulf %90, %103 : vector<1x8xf32>
    %cst_29 = arith.constant -0.186288059 : f32
    %105 = vector.broadcast %cst_29 : f32 to vector<1x8xf32>
    %106 = arith.addf %105, %104 : vector<1x8xf32>
    %107 = arith.mulf %90, %106 : vector<1x8xf32>
    %cst_30 = arith.constant 0.0967841818 : f32
    %108 = vector.broadcast %cst_30 : f32 to vector<1x8xf32>
    %109 = arith.addf %108, %107 : vector<1x8xf32>
    %110 = arith.mulf %90, %109 : vector<1x8xf32>
    %cst_31 = arith.constant 0.374091953 : f32
    %111 = vector.broadcast %cst_31 : f32 to vector<1x8xf32>
    %112 = arith.addf %111, %110 : vector<1x8xf32>
    %113 = arith.mulf %90, %112 : vector<1x8xf32>
    %cst_32 = arith.constant 1.00002372 : f32
    %114 = vector.broadcast %cst_32 : f32 to vector<1x8xf32>
    %115 = arith.addf %114, %113 : vector<1x8xf32>
    %116 = arith.mulf %90, %115 : vector<1x8xf32>
    %cst_33 = arith.constant -1.26551223 : f32
    %117 = vector.broadcast %cst_33 : f32 to vector<1x8xf32>
    %118 = arith.addf %117, %116 : vector<1x8xf32>
    %cst_34 = arith.constant 0.000000e+00 : f32
    %119 = vector.broadcast %cst_34 : f32 to vector<1x8xf32>
    %120 = arith.subf %119, %83 : vector<1x8xf32>
    %121 = arith.mulf %120, %83 : vector<1x8xf32>
    %122 = arith.addf %121, %118 : vector<1x8xf32>
    %123 = math.exp %122 : vector<1x8xf32>
    %124 = arith.mulf %90, %123 : vector<1x8xf32>
    %cst_35 = arith.constant 0.000000e+00 : f32
    %125 = vector.broadcast %cst_35 : f32 to vector<1x8xf32>
    %126 = arith.cmpf oge, %83, %125 : vector<1x8xf32>
    %cst_36 = arith.constant 2.000000e+00 : f32
    %127 = vector.broadcast %cst_36 : f32 to vector<1x8xf32>
    %128 = arith.subf %127, %124 : vector<1x8xf32>
    %129 = arith.select %126, %124, %128 : vector<1x8xi1>, vector<1x8xf32>
    %cst_37 = arith.constant 5.000000e-01 : f32
    %130 = vector.broadcast %cst_37 : f32 to vector<1x8xf32>
    %131 = arith.mulf %130, %129 : vector<1x8xf32>
    %cst_38 = arith.constant 2.000000e+00 : f32
    %132 = vector.broadcast %cst_38 : f32 to vector<1x8xf32>
    %133 = arith.mulf %132, %131 : vector<1x8xf32>
    %cst_39 = arith.constant 9.99999996E-13 : f32
    %134 = vector.broadcast %cst_39 : f32 to vector<1x8xf32>
    %135 = arith.addf %133, %134 : vector<1x8xf32>
    %136 = math.log %135 : vector<1x8xf32>
    %cst_40 = arith.constant 0.000000e+00 : f32
    %137 = vector.broadcast %cst_40 : f32 to vector<1x8xf32>
    %138 = arith.subf %137, %136 : vector<1x8xf32>
    %c0_41 = arith.constant 0 : index
    %c0_42 = arith.constant 0 : index
    %139 = vector.load %arg6[%c0_41, %c0_42] : memref<1x8xf32, #tpu.memory_space<vmem>>, vector<1x8xf32>
    tpu.vector_store %arg6[%c0_41, %c0_42], %138 {strides = array<i32>} : memref<1x8xf32, #tpu.memory_space<vmem>>, vector<1x8xf32>,
    return
  }
  func.func @transform_0(%arg0: i32) -> (i32, i32, i32) {
    %c0_i32 = arith.constant 0 : i32
    %c0_i32_0 = arith.constant 0 : i32
    %c0_i32_1 = arith.constant 0 : i32
    return %c0_i32, %c0_i32_0, %arg0 : i32, i32, i32
  }
  func.func @transform_1(%arg0: i32) -> (i32, i32) {
    %c0_i32 = arith.constant 0 : i32
    %c0_i32_0 = arith.constant 0 : i32
    return %c0_i32, %arg0 : i32, i32
  }
  func.func @transform_2(%arg0: i32) -> (i32, i32, i32) {
    %c0_i32 = arith.constant 0 : i32
    %c0_i32_0 = arith.constant 0 : i32
    %c0_i32_1 = arith.constant 0 : i32
    %c0_i32_2 = arith.constant 0 : i32
    return %c0_i32, %c0_i32_0, %c0_i32_1 : i32, i32, i32
  }
  func.func @transform_3(%arg0: i32) -> (i32, i32, i32) {
    %c0_i32 = arith.constant 0 : i32
    %c0_i32_0 = arith.constant 0 : i32
    %c0_i32_1 = arith.constant 0 : i32
    %c0_i32_2 = arith.constant 0 : i32
    return %c0_i32, %c0_i32_0, %c0_i32_1 : i32, i32, i32
  }
  func.func @transform_4(%arg0: i32) -> (i32, i32) {
    %c0_i32 = arith.constant 0 : i32
    %c0_i32_0 = arith.constant 0 : i32
    %c0_i32_1 = arith.constant 0 : i32
    return %c0_i32, %c0_i32_0 : i32, i32
  }
  func.func @transform_5(%arg0: i32) -> (i32, i32) {
    %c0_i32 = arith.constant 0 : i32
    %c0_i32_0 = arith.constant 0 : i32
    return %c0_i32, %arg0 : i32, i32
  }
}

</mosaic_0001>

<bundles_post_ra>
// kernel: tpu_custom_call.1
= control target key start
LH: loop header
LB: loop body
LE: loop exit
PB: predicated region body
PF: predicated region fallthrough
CT: control target
= control target key end

     0   :  { %v2118_v2 = vmov 0   ;;  %s3417_s0 = inlined_call_operand.vmem [shape: s32[1,1,8], index: 0, kind: input, shape index: {}]   ;;  %s3418_s1 = inlined_call_operand.vmem [shape: f32[1,8], index: 1, kind: input, shape index: {}]   ;;  %s3419_s2 = inlined_call_operand.vmem [shape: f32[16,74,1], index: 2, kind: input, shape index: {}]   ;;  %s3420_s3 = inlined_call_operand.vmem [shape: f32[17,1,1], index: 3, kind: input, shape index: {}]   ;;  %s3421_s4 = inlined_call_operand.<no memory space> [shape: f32[1,1], index: 4, kind: input, shape index: {}]   ;;  %s3422_s5 = inlined_call_operand.hbm [shape: f32[1,8], index: 5, kind: output, shape index: {}]  }
   0x1   :  { %v73_v0 = vld [vmem:[%s3419_s2 + $0x10] sm:$0xff]  ;;  %v71_v1 = vld [vmem:[%s3419_s2] sm:$0xff]  ;;  %2086 = vset.pattern.permute.xlu1 %v2118_v2  ;;  %2085 = vset.pattern.permute.xlu0 %v2118_v2  ;;  %v74_v3 = vld [vmem:[%s3419_s2 + $0x18] sm:$0xff] }
   0x2   :  { %339 = vperm.xlu1 %2086, %v73_v0   ;;  %329 = vperm.xlu0 %2085, %v71_v1   ;;  %v72_v4 = vld [vmem:[%s3419_s2 + $0x8] sm:$0xff]  ;;  %v75_v6 = vld [vmem:[%s3419_s2 + $0x20] sm:$0xff]  ;;  %v78_v7 = vld [vmem:[%s3419_s2 + $0x38] sm:$0xff] }
   0x3   :  { %v76_v5 = vld [vmem:[%s3419_s2 + $0x28] sm:$0xff]  ;;  %v77_v8 = vld [vmem:[%s3419_s2 + $0x30] sm:$0xff]  ;;  %v79_v10 = vld [vmem:[%s3419_s2 + $0x40] sm:$0xff] }
   0x4   :  { %v80_v9 = vld [vmem:[%s3419_s2 + $0x48] sm:$0x3]  ;;  %v82_v11 = vld [vmem:[%s3419_s2 + $0x58] sm:$0xff]  ;;  %v81_v12 = vld [vmem:[%s3419_s2 + $0x50] sm:$0xff] }
   0x5   :  { %v84_v13 = vld [vmem:[%s3419_s2 + $0x68] sm:$0xff]  ;;  %v83_v14 = vld [vmem:[%s3419_s2 + $0x60] sm:$0xff] }
   0x6   :  { %344 = vperm.xlu1 %2086, %v74_v3   ;;  %334 = vperm.xlu0 %2085, %v72_v4  }
   0xa   :  { %354 = vperm.xlu1 %2086, %v76_v5   ;;  %349 = vperm.xlu0 %2085, %v75_v6  }
   0xe   :  { %364 = vperm.xlu1 %2086, %v78_v7   ;;  %359 = vperm.xlu0 %2085, %v77_v8  }
  0x12   :  { %374 = vperm.xlu1 %2086, %v80_v9   ;;  %369 = vperm.xlu0 %2085, %v79_v10  }
  0x16   :  { %384 = vperm.xlu1 %2086, %v82_v11   ;;  %379 = vperm.xlu0 %2085, %v81_v12  }
  0x1a   :  { %394 = vperm.xlu1 %2086, %v84_v13   ;;  %389 = vperm.xlu0 %2085, %v83_v14  }
  0x1b   :  { %11 = vsyncpa [#allocation4], 0  ;;  %v86_v15 = vld [vmem:[%s3419_s2 + $0x78] sm:$0xff]  ;;  %v85_v16 = vld [vmem:[%s3419_s2 + $0x70] sm:$0xff]  ;;  %v247_v11 = vlaneseq  ;;  %vm1287_vm2 = vcmask 64512   ;;  %vm1567_vm3 = vcmask 58368  }
  0x1c   :  { %v88_v17 = vld [vmem:[%s3419_s2 + $0x88] sm:$0xff]  ;;  %v87_v18 = vld [vmem:[%s3419_s2 + $0x80] sm:$0xff]  ;;  %v90_v19 = vld [vmem:[%s3419_s2 + $0x98] sm:$0x3]  ;;  %s1962_s22 = smul.f32 2.0, %s3421_s4  ;;  %s2120_s4 = smov [#allocation3]  }
  0x1d   :  { %v89_v20 = vld [vmem:[%s3419_s2 + $0x90] sm:$0xff]  ;;  %v92_v21 = vld [vmem:[%s3419_s2 + $0xa8] sm:$0xff]  ;;  %v91_v22 = vld [vmem:[%s3419_s2 + $0xa0] sm:$0xff]  ;;  %s2021_s23 = sshll.u32 %s2120_s4, 4  ;;  %s2022_s23 = int_to_ptr.vmem [resolvable:$true] %s2021_s23 }
  0x1e   :  { %404 = vperm.xlu1 %2086, %v86_v15   ;;  %399 = vperm.xlu0 %2085, %v85_v16   ;;  %v94_v23 = vld [vmem:[%s3419_s2 + $0xb8] sm:$0xff]  ;;  %v93_v24 = vld [vmem:[%s3419_s2 + $0xb0] sm:$0xff]  ;;  %v96_v25 = vld [vmem:[%s3419_s2 + $0xc8] sm:$0xff]  ;;  %s2094_s24 = scalar_lea.vmem %s2022_s23, 16  ;;  %s2098_s25 = scalar_lea.vmem %s2022_s23, 32 }
  0x1f   :  { %v95_v26 = vld [vmem:[%s3419_s2 + $0xc0] sm:$0xff]  ;;  %v98_v27 = vld [vmem:[%s3419_s2 + $0xd8] sm:$0xff]  ;;  %v97_v28 = vld [vmem:[%s3419_s2 + $0xd0] sm:$0xff]  ;;  %p2095_p0 = scmp.ne.s32.totalorder %s2022_s23, %s2094_s24  ;;  %p2099_p1 = scmp.lt.s32.totalorder %s2022_s23, %s2022_s23 }
  0x20   :  { %v100_v29 = vld [vmem:[%s3419_s2 + $0xe8] sm:$0x3]  ;;  %v99_v30 = vld [vmem:[%s3419_s2 + $0xe0] sm:$0xff]  ;;  %v102_v31 = vld [vmem:[%s3419_s2 + $0xf8] sm:$0xff]  ;;  %p2100_p2 = scmp.lt.s32.totalorder %s2098_s25, %s2094_s24 }
  0x21   :  { %v101_v32 = vld [vmem:[%s3419_s2 + $0xf0] sm:$0xff]  ;;  %v104_v33 = vld [vmem:[%s3419_s2 + $0x108] sm:$0xff]  ;;  %v103_v34 = vld [vmem:[%s3419_s2 + $0x100] sm:$0xff] }
  0x22   :  { %414 = vperm.xlu1 %2086, %v88_v17   ;;  %409 = vperm.xlu0 %2085, %v87_v18   ;;  %v106_v35 = vld [vmem:[%s3419_s2 + $0x118] sm:$0xff]  ;;  %v105_v36 = vld [vmem:[%s3419_s2 + $0x110] sm:$0xff]  ;;  %v108_v37 = vld [vmem:[%s3419_s2 + $0x128] sm:$0xff]  ;;  %v2376_v17 = vshrl.u32 %v247_v11, 7  ;;  %p2101_p3 = por %p2100_p2, %p2099_p1 }
  0x23   :  { %v107_v38 = vld [vmem:[%s3419_s2 + $0x120] sm:$0xff]  ;;  %v110_v39 = vld [vmem:[%s3419_s2 + $0x138] sm:$0x3]  ;;  %v109_v40 = vld [vmem:[%s3419_s2 + $0x130] sm:$0xff] }
  0x24   :  { %v112_v41 = vld [vmem:[%s3419_s2 + $0x148] sm:$0xff]  ;;  %v111_v42 = vld [vmem:[%s3419_s2 + $0x140] sm:$0xff]  ;;  %v114_v43 = vld [vmem:[%s3419_s2 + $0x158] sm:$0xff]  ;;  %p2102_p4 = pnand %p2101_p3, %p2095_p0 }
  0x25   :  { %v113_v44 = vld [vmem:[%s3419_s2 + $0x150] sm:$0xff]  ;;  %v116_v45 = vld [vmem:[%s3419_s2 + $0x168] sm:$0xff]  ;;  %v115_v46 = vld [vmem:[%s3419_s2 + $0x160] sm:$0xff] }
  0x26   :  { %424 = vperm.xlu1 %2086, %v90_v19   ;;  %419 = vperm.xlu0 %2085, %v89_v20   ;;  %v118_v47 = vld [vmem:[%s3419_s2 + $0x178] sm:$0xff]  ;;  %v117_v48 = vld [vmem:[%s3419_s2 + $0x170] sm:$0xff]  ;;  %v120_v49 = vld [vmem:[%s3419_s2 + $0x188] sm:$0x3] }
  0x27   :  { %v119_v50 = vld [vmem:[%s3419_s2 + $0x180] sm:$0xff]  ;;  %v122_v51 = vld [vmem:[%s3419_s2 + $0x198] sm:$0xff]  ;;  %v121_v52 = vld [vmem:[%s3419_s2 + $0x190] sm:$0xff] }
  0x28   :  { %v124_v53 = vld [vmem:[%s3419_s2 + $0x1a8] sm:$0xff]  ;;  %v123_v54 = vld [vmem:[%s3419_s2 + $0x1a0] sm:$0xff]  ;;  %v126_v55 = vld [vmem:[%s3419_s2 + $0x1b8] sm:$0xff] }
  0x29   :  { %v125_v56 = vld [vmem:[%s3419_s2 + $0x1b0] sm:$0xff]  ;;  %v128_v57 = vld [vmem:[%s3419_s2 + $0x1c8] sm:$0xff]  ;;  %v127_v58 = vld [vmem:[%s3419_s2 + $0x1c0] sm:$0xff] }
  0x2a   :  { %434 = vperm.xlu1 %2086, %v92_v21   ;;  %429 = vperm.xlu0 %2085, %v91_v22   ;;  %v130_v59 = vld [vmem:[%s3419_s2 + $0x1d8] sm:$0x3]  ;;  %v129_v60 = vld [vmem:[%s3419_s2 + $0x1d0] sm:$0xff]  ;;  %v132_v61 = vld [vmem:[%s3419_s2 + $0x1e8] sm:$0xff]  ;;  %v2386_v22 = vsub.s32 0, %v2376_v17 }
  0x2b   :  { %v131_v62 = vld [vmem:[%s3419_s2 + $0x1e0] sm:$0xff]  ;;  %v134_v63 = vld [vmem:[%s3419_s2 + $0x1f8] sm:$0xff]  ;;  %v133_v0 = vld [vmem:[%s3419_s2 + $0x1f0] sm:$0xff] }
  0x2c   :  { %v136_v1 = vld [vmem:[%s3419_s2 + $0x208] sm:$0xff]  ;;  %v135_v2 = vld [vmem:[%s3419_s2 + $0x200] sm:$0xff]  ;;  %v138_v5 = vld [vmem:[%s3419_s2 + $0x218] sm:$0xff] }
  0x2d   :  { %v137_v6 = vld [vmem:[%s3419_s2 + $0x210] sm:$0xff]  ;;  %v140_v9 = vld [vmem:[%s3419_s2 + $0x228] sm:$0x3]  ;;  %v139_v10 = vld [vmem:[%s3419_s2 + $0x220] sm:$0xff] }
  0x2e   :  { %444 = vperm.xlu1 %2086, %v94_v23   ;;  %439 = vperm.xlu0 %2085, %v93_v24   ;;  %v142_v14 = vld [vmem:[%s3419_s2 + $0x238] sm:$0xff]  ;;  %v141_v15 = vld [vmem:[%s3419_s2 + $0x230] sm:$0xff]  ;;  %v2374_v16 = vld [vmem:[%s3417_s0] sm:$0x1] }
  0x2f   :  { %vm23_vm0 = vcmp.eq.s32.totalorder %v2374_v16, 0  ;;  %v144_v20 = vld [vmem:[%s3419_s2 + $0x248] sm:$0xff]  ;;  %v143_v21 = vld [vmem:[%s3419_s2 + $0x240] sm:$0xff]  ;;  %vm24_vm1 = vcmp.eq.s32.totalorder %v2374_v16, 1  ;;  %vm25_vm4 = vcmp.eq.s32.totalorder %v2374_v16, 2  ;;  %vm26_vm5 = vcmp.eq.s32.totalorder %v2374_v16, 3 }
  0x30   :  { %vm27_vm6 = vcmp.eq.s32.totalorder %v2374_v16, 4  ;;  %vm28_vm7 = vcmp.eq.s32.totalorder %v2374_v16, 5  ;;  %vm29_vm8 = vcmp.eq.s32.totalorder %v2374_v16, 6  ;;  %vm30_vm9 = vcmp.eq.s32.totalorder %v2374_v16, 7 }
  0x31   :  { %vm31_vm10 = vcmp.eq.s32.totalorder %v2374_v16, 8  ;;  %vm32_vm11 = vcmp.eq.s32.totalorder %v2374_v16, 9 }
  0x32   :  { %454 = vperm.xlu1 %2086, %v96_v25   ;;  %449 = vperm.xlu0 %2085, %v95_v26   ;;  %v2119_v25 = vmov 0.0  }
  0x33   :  { %v2029_v26 = vsel %vm23_vm0, 1.0, %v2119_v25 }
  0x36   :  { %464 = vperm.xlu1 %2086, %v98_v27   ;;  %459 = vperm.xlu0 %2085, %v97_v28   ;;  %v146_v27 = vld [vmem:[%s3419_s2 + $0x258] sm:$0xff]  ;;  %v145_v28 = vld [vmem:[%s3419_s2 + $0x250] sm:$0xff] }
  0x3a   :  { %474 = vperm.xlu1 %2086, %v100_v29   ;;  %469 = vperm.xlu0 %2085, %v99_v30   ;;  %v2401_v29 = vrot.slane %v2029_v26, %v2386_v22  ;;  %v155_v26 = vld [vmem:[%s3419_s2 + $0x2a0] sm:$0xff] }
  0x3e   :  { %484 = vperm.xlu1 %2086, %v102_v31   ;;  %479 = vperm.xlu0 %2085, %v101_v32   ;;  %v2030_v31 = vsel %vm24_vm1, 1.0, %v2119_v25 }
  0x42   :  { %494 = vperm.xlu1 %2086, %v104_v33   ;;  %489 = vperm.xlu0 %2085, %v103_v34   ;;  %v148_v34 = vld [vmem:[%s3419_s2 + $0x268] sm:$0xff] }
  0x46   :  { %504 = vperm.xlu1 %2086, %v106_v35   ;;  %499 = vperm.xlu0 %2085, %v105_v36   ;;  %v147_v35 = vld [vmem:[%s3419_s2 + $0x260] sm:$0xff] }
  0x4a   :  { %514 = vperm.xlu1 %2086, %v108_v37   ;;  %509 = vperm.xlu0 %2085, %v107_v38   ;;  %v2417_v37 = vrot.slane %v2030_v31, %v2386_v22 }
  0x4e   :  { %524 = vperm.xlu1 %2086, %v110_v39   ;;  %519 = vperm.xlu0 %2085, %v109_v40  }
  0x52   :  { %534 = vperm.xlu1 %2086, %v112_v41   ;;  %529 = vperm.xlu0 %2085, %v111_v42  }
  0x56   :  { %544 = vperm.xlu1 %2086, %v114_v43   ;;  %539 = vperm.xlu0 %2085, %v113_v44   ;;  %v150_v44 = vld [vmem:[%s3419_s2 + $0x278] sm:$0x3] }
  0x5a   :  { %554 = vperm.xlu1 %2086, %v116_v45   ;;  %549 = vperm.xlu0 %2085, %v115_v46   ;;  %v149_v45 = vld [vmem:[%s3419_s2 + $0x270] sm:$0xff] }
  0x5e   :  { %564 = vperm.xlu1 %2086, %v118_v47   ;;  %559 = vperm.xlu0 %2085, %v117_v48  }
  0x62   :  { %574 = vperm.xlu1 %2086, %v120_v49   ;;  %569 = vperm.xlu0 %2085, %v119_v50  }
  0x66   :  { %584 = vperm.xlu1 %2086, %v122_v51   ;;  %579 = vperm.xlu0 %2085, %v121_v52  }
  0x6a   :  { %594 = vperm.xlu1 %2086, %v124_v53   ;;  %589 = vperm.xlu0 %2085, %v123_v54  }
  0x6e   :  { %604 = vperm.xlu1 %2086, %v126_v55   ;;  %599 = vperm.xlu0 %2085, %v125_v56  }
  0x72   :  { %614 = vperm.xlu1 %2086, %v128_v57   ;;  %609 = vperm.xlu0 %2085, %v127_v58   ;;  %v152_v58 = vld [vmem:[%s3419_s2 + $0x288] sm:$0xff] }
  0x76   :  { %624 = vperm.xlu1 %2086, %v130_v59   ;;  %619 = vperm.xlu0 %2085, %v129_v60   ;;  %v151_v59 = vld [vmem:[%s3419_s2 + $0x280] sm:$0xff] }
  0x7a   :  { %634 = vperm.xlu1 %2086, %v132_v61   ;;  %629 = vperm.xlu0 %2085, %v131_v62  }
  0x7e   :  { %644 = vperm.xlu1 %2086, %v134_v63   ;;  %639 = vperm.xlu0 %2085, %v133_v0  }
  0x81   :  { %v340_v3 = vpop.permute.xlu1 %339  ;;  %v2349_v4 = vpop.permute.xlu0 %329 }
  0x82   :  { %654 = vperm.xlu1 %2086, %v136_v1   ;;  %649 = vperm.xlu0 %2085, %v135_v2   ;;  %v1129_v33 = vmul.f32 %v340_v3, %v2401_v29 }
  0x84   :  { %v1350_v42 = vsel %vm1287_vm2, %v1129_v33, 0.0 }
  0x85   :  { %v345_v7 = vpop.permute.xlu1 %344  ;;  %v2357_v8 = vpop.permute.xlu0 %334 }
  0x86   :  { %664 = vperm.xlu1 %2086, %v138_v5   ;;  %659 = vperm.xlu0 %2085, %v137_v6   ;;  %v1130_v36 = vmul.f32 %v345_v7, %v2401_v29 }
  0x88   :  { %v1381_v46 = vsel %vm1287_vm2, %v1130_v36, 0.0  ;;  %v158_v36 = vld [vmem:[%s3419_s2 + $0x2b8] sm:$0xff] }
  0x89   :  { %v355_v12 = vpop.permute.xlu1 %354  ;;  %v350_v13 = vpop.permute.xlu0 %349 }
  0x8a   :  { %674 = vperm.xlu1 %2086, %v140_v9   ;;  %669 = vperm.xlu0 %2085, %v139_v10   ;;  %v1132_v43 = vmul.f32 %v355_v12, %v2401_v29  ;;  %v1131_v47 = vmul.f32 %v350_v13, %v2401_v29  ;;  %v154_v9 = vld [vmem:[%s3419_s2 + $0x298] sm:$0xff]  ;;  %v153_v10 = vld [vmem:[%s3419_s2 + $0x290] sm:$0xff] }
  0x8c   :  { %v1443_v56 = vsel %vm1287_vm2, %v1132_v43, 0.0  ;;  %v1412_v60 = vsel %vm1287_vm2, %v1131_v47, 0.0 }
  0x8d   :  { %v365_v18 = vpop.permute.xlu1 %364  ;;  %v360_v19 = vpop.permute.xlu0 %359 }
  0x8e   :  { %684 = vperm.xlu1 %2086, %v142_v14   ;;  %679 = vperm.xlu0 %2085, %v141_v15   ;;  %v1134_v57 = vmul.f32 %v365_v18, %v2401_v29  ;;  %v1133_v61 = vmul.f32 %v360_v19, %v2401_v29 }
  0x90   :  { %v1505_v7 = vsel %vm1287_vm2, %v1134_v57, 0.0  ;;  %v1474_v11 = vsel %vm1287_vm2, %v1133_v61, 0.0  ;;  %v161_v57 = vld [vmem:[%s3419_s2 + $0x2d0] sm:$0xff] }
  0x91   :  { %v2388_v23 = vpop.permute.xlu1 %374  ;;  %v2390_v24 = vpop.permute.xlu0 %369 }
  0x92   :  { %694 = vperm.xlu1 %2086, %v144_v20   ;;  %689 = vperm.xlu0 %2085, %v143_v21   ;;  %v1136_v12 = vmul.f32 %v2388_v23, %v2401_v29  ;;  %v156_v23 = vld [vmem:[%s3419_s2 + $0x2a8] sm:$0xff] }
  0x95   :  { %v2403_v30 = vpop.permute.xlu1 %384  ;;  %v2406_v32 = vpop.permute.xlu0 %379 }
  0x96   :  { %704 = vperm.xlu1 %2086, %v146_v27   ;;  %699 = vperm.xlu0 %2085, %v145_v28   ;;  %v1568_v27 = vsel %vm1567_vm3, %v1136_v12, 0.0  ;;  %v165_v12 = vld [vmem:[%s3419_s2 + $0x2f0] sm:$0xff] }
  0x99   :  { %v395_v38 = vpop.permute.xlu1 %394  ;;  %v390_v39 = vpop.permute.xlu0 %389 }
  0x9a   :  { %v1140_v40 = vmul.f32 %v395_v38, %v2417_v37  ;;  %v1139_v41 = vmul.f32 %v390_v39, %v2417_v37  ;;  %714 = vperm.xlu1 %2086, %v148_v34   ;;  %709 = vperm.xlu0 %2085, %v147_v35   ;;  %v2031_v34 = vsel %vm25_vm4, 1.0, %v2119_v25  ;;  %v157_v38 = vld [vmem:[%s3419_s2 + $0x2b0] sm:$0xff] }
  0x9b   :  { %v2489_v39 = vrot.slane %v2031_v34, %v2386_v22 }
  0x9c   :  { %v1382_v48 = vsel %vm1287_vm2, %v1140_v40, 0.0  ;;  %v1351_v49 = vsel %vm1287_vm2, %v1139_v41, 0.0 }
  0x9d   :  { %v2433_v50 = vadd.f32 %v1382_v48, %v1381_v46  ;;  %v2435_v51 = vadd.f32 %v1351_v49, %v1350_v42  ;;  %v405_v52 = vpop.permute.xlu1 %404  ;;  %v400_v53 = vpop.permute.xlu0 %399 }
  0x9e   :  { %v1142_v54 = vmul.f32 %v405_v52, %v2417_v37  ;;  %v1141_v55 = vmul.f32 %v400_v53, %v2417_v37  ;;  %724 = vperm.xlu1 %2086, %v150_v44   ;;  %719 = vperm.xlu0 %2085, %v149_v45   ;;  %v160_v44 = vld [vmem:[%s3419_s2 + $0x2c8] sm:$0x3]  ;;  %v159_v45 = vld [vmem:[%s3419_s2 + $0x2c0] sm:$0xff] }
  0xa0   :  { %v1444_v62 = vsel %vm1287_vm2, %v1142_v54, 0.0  ;;  %v1413_v63 = vsel %vm1287_vm2, %v1141_v55, 0.0 }
  0xa1   :  { %v1445_v0 = vadd.f32 %v1444_v62, %v1443_v56  ;;  %v1414_v1 = vadd.f32 %v1413_v63, %v1412_v60  ;;  %v415_v2 = vpop.permute.xlu1 %414  ;;  %v410_v3 = vpop.permute.xlu0 %409  ;;  %v162_v56 = vld [vmem:[%s3419_s2 + $0x2d8] sm:$0xff] }
  0xa2   :  { %v1144_v5 = vmul.f32 %v415_v2, %v2417_v37  ;;  %v1143_v6 = vmul.f32 %v410_v3, %v2417_v37  ;;  %734 = vperm.xlu1 %2086, %v152_v58   ;;  %729 = vperm.xlu0 %2085, %v151_v59   ;;  %v164_v2 = vld [vmem:[%s3419_s2 + $0x2e8] sm:$0xff]  ;;  %v163_v3 = vld [vmem:[%s3419_s2 + $0x2e0] sm:$0xff] }
  0xa4   :  { %v1506_v13 = vsel %vm1287_vm2, %v1144_v5, 0.0  ;;  %v1475_v14 = vsel %vm1287_vm2, %v1143_v6, 0.0 }
  0xa5   :  { %v1507_v15 = vadd.f32 %v1506_v13, %v1505_v7  ;;  %v1476_v18 = vadd.f32 %v1475_v14, %v1474_v11  ;;  %v425_v19 = vpop.permute.xlu1 %424  ;;  %v2465_v20 = vpop.permute.xlu0 %419  ;;  %v166_v11 = vld [vmem:[%s3419_s2 + $0x2f8] sm:$0xff] }
  0xa6   :  { %v1146_v21 = vmul.f32 %v425_v19, %v2417_v37  ;;  %744 = vperm.xlu1 %2086, %v154_v9   ;;  %739 = vperm.xlu0 %2085, %v153_v10  }
  0xa8   :  { %v1569_v28 = vsel %vm1567_vm3, %v1146_v21, 0.0  ;;  %v168_v21 = vld [vmem:[%s3419_s2 + $0x308] sm:$0xff] }
  0xa9   :  { %v1570_v31 = vadd.f32 %v1569_v28, %v1568_v27  ;;  %v2477_v33 = vpop.permute.xlu1 %434  ;;  %v2480_v35 = vpop.permute.xlu0 %429 }
  0xaa   :  { %754 = vperm.xlu1 %2086, %v156_v23   ;;  %749 = vperm.xlu0 %2085, %v155_v26   ;;  %v167_v23 = vld [vmem:[%s3419_s2 + $0x300] sm:$0xff] }
  0xad   :  { %v445_v40 = vpop.permute.xlu1 %444  ;;  %v440_v41 = vpop.permute.xlu0 %439 }
  0xae   :  { %v1150_v42 = vmul.f32 %v445_v40, %v2489_v39  ;;  %v1149_v43 = vmul.f32 %v440_v41, %v2489_v39  ;;  %764 = vperm.xlu1 %2086, %v158_v36   ;;  %759 = vperm.xlu0 %2085, %v157_v38   ;;  %v170_v36 = vld [vmem:[%s3419_s2 + $0x318] sm:$0x3]  ;;  %v169_v38 = vld [vmem:[%s3419_s2 + $0x310] sm:$0xff] }
  0xb0   :  { %v1384_v46 = vsel %vm1287_vm2, %v1150_v42, 0.0  ;;  %v1353_v47 = vsel %vm1287_vm2, %v1149_v43, 0.0 }
  0xb1   :  { %v1385_v48 = vadd.f32 %v1384_v46, %v2433_v50  ;;  %v1354_v49 = vadd.f32 %v1353_v47, %v2435_v51  ;;  %v455_v52 = vpop.permute.xlu1 %454  ;;  %v450_v53 = vpop.permute.xlu0 %449 }
  0xb2   :  { %v1152_v54 = vmul.f32 %v455_v52, %v2489_v39  ;;  %v1151_v55 = vmul.f32 %v450_v53, %v2489_v39  ;;  %774 = vperm.xlu1 %2086, %v160_v44   ;;  %769 = vperm.xlu0 %2085, %v159_v45   ;;  %v172_v52 = vld [vmem:[%s3419_s2 + $0x328] sm:$0xff]  ;;  %v171_v53 = vld [vmem:[%s3419_s2 + $0x320] sm:$0xff] }
  0xb4   :  { %v1446_v50 = vsel %vm1287_vm2, %v1152_v54, 0.0  ;;  %v1415_v51 = vsel %vm1287_vm2, %v1151_v55, 0.0 }
  0xb5   :  { %v1447_v58 = vadd.f32 %v1446_v50, %v1445_v0  ;;  %v1416_v59 = vadd.f32 %v1415_v51, %v1414_v1  ;;  %v465_v60 = vpop.permute.xlu1 %464  ;;  %v460_v61 = vpop.permute.xlu0 %459 }
  0xb6   :  { %v1154_v62 = vmul.f32 %v465_v60, %v2489_v39  ;;  %v1153_v63 = vmul.f32 %v460_v61, %v2489_v39  ;;  %784 = vperm.xlu1 %2086, %v162_v56   ;;  %779 = vperm.xlu0 %2085, %v161_v57   ;;  %v174_v60 = vld [vmem:[%s3419_s2 + $0x338] sm:$0xff]  ;;  %v173_v61 = vld [vmem:[%s3419_s2 + $0x330] sm:$0xff] }
  0xb8   :  { %v1508_v5 = vsel %vm1287_vm2, %v1154_v62, 0.0  ;;  %v1477_v0 = vsel %vm1287_vm2, %v1153_v63, 0.0 }
  0xb9   :  { %v1509_v1 = vadd.f32 %v1508_v5, %v1507_v15  ;;  %v1478_v6 = vadd.f32 %v1477_v0, %v1476_v18  ;;  %v475_v7 = vpop.permute.xlu1 %474  ;;  %v2523_v9 = vpop.permute.xlu0 %469  ;;  %v2032_v18 = vsel %vm26_vm5, 1.0, %v2119_v25  ;;  %v176_v0 = vld [vmem:[%s3419_s2 + $0x348] sm:$0xff] }
  0xba   :  { %v1156_v10 = vmul.f32 %v475_v7, %v2489_v39  ;;  %794 = vperm.xlu1 %2086, %v164_v2   ;;  %789 = vperm.xlu0 %2085, %v163_v3   ;;  %v2546_v26 = vrot.slane %v2032_v18, %v2386_v22  ;;  %v175_v7 = vld [vmem:[%s3419_s2 + $0x340] sm:$0xff]  ;;  %v177_v18 = vld [vmem:[%s3419_s2 + $0x350] sm:$0xff] }
  0xbc   :  { %v1571_v13 = vsel %vm1567_vm3, %v1156_v10, 0.0 }
  0xbd   :  { %v1572_v14 = vadd.f32 %v1571_v13, %v1570_v31  ;;  %v2534_v15 = vpop.permute.xlu1 %484  ;;  %v2537_v19 = vpop.permute.xlu0 %479  ;;  %v179_v13 = vld [vmem:[%s3419_s2 + $0x360] sm:$0xff] }
  0xbe   :  { %804 = vperm.xlu1 %2086, %v166_v11   ;;  %799 = vperm.xlu0 %2085, %v165_v12   ;;  %v2033_v11 = vsel %vm27_vm6, 1.0, %v2119_v25 }
  0xc1   :  { %v495_v27 = vpop.permute.xlu1 %494  ;;  %v490_v28 = vpop.permute.xlu0 %489 }
  0xc2   :  { %v1160_v31 = vmul.f32 %v495_v27, %v2546_v26  ;;  %v1159_v34 = vmul.f32 %v490_v28, %v2546_v26  ;;  %814 = vperm.xlu1 %2086, %v168_v21   ;;  %809 = vperm.xlu0 %2085, %v167_v23   ;;  %v2601_v21 = vrot.slane %v2033_v11, %v2386_v22 }
  0xc4   :  { %v1386_v40 = vsel %vm1287_vm2, %v1160_v31, 0.0  ;;  %v1355_v41 = vsel %vm1287_vm2, %v1159_v34, 0.0  ;;  %v199_v31 = vld [vmem:[%s3419_s2 + $0x400] sm:$0xff]  ;;  %v189_v34 = vld [vmem:[%s3419_s2 + $0x3b0] sm:$0xff] }
  0xc5   :  { %v1387_v42 = vadd.f32 %v1386_v40, %v1385_v48  ;;  %v1356_v43 = vadd.f32 %v1355_v41, %v1354_v49  ;;  %v505_v44 = vpop.permute.xlu1 %504  ;;  %v500_v45 = vpop.permute.xlu0 %499 }
  0xc6   :  { %v1162_v46 = vmul.f32 %v505_v44, %v2546_v26  ;;  %v1161_v47 = vmul.f32 %v500_v45, %v2546_v26  ;;  %824 = vperm.xlu1 %2086, %v170_v36   ;;  %819 = vperm.xlu0 %2085, %v169_v38  }
  0xc8   :  { %v1448_v54 = vsel %vm1287_vm2, %v1162_v46, 0.0  ;;  %v1417_v48 = vsel %vm1287_vm2, %v1161_v47, 0.0 }
  0xc9   :  { %v1449_v49 = vadd.f32 %v1448_v54, %v1447_v58  ;;  %v1418_v55 = vadd.f32 %v1417_v48, %v1416_v59  ;;  %v515_v56 = vpop.permute.xlu1 %514  ;;  %v510_v57 = vpop.permute.xlu0 %509 }
  0xca   :  { %v1164_v50 = vmul.f32 %v515_v56, %v2546_v26  ;;  %v1163_v51 = vmul.f32 %v510_v57, %v2546_v26  ;;  %834 = vperm.xlu1 %2086, %v172_v52   ;;  %829 = vperm.xlu0 %2085, %v171_v53   ;;  %v219_v52 = vld [vmem:[%s3419_s2 + $0x4a0] sm:$0xff]  ;;  %v209_v53 = vld [vmem:[%s3419_s2 + $0x450] sm:$0xff] }
  0xcc   :  { %v1510_v62 = vsel %vm1287_vm2, %v1164_v50, 0.0  ;;  %v1479_v58 = vsel %vm1287_vm2, %v1163_v51, 0.0 }
  0xcd   :  { %v1511_v59 = vadd.f32 %v1510_v62, %v1509_v1  ;;  %v1480_v63 = vadd.f32 %v1479_v58, %v1478_v6  ;;  %v525_v2 = vpop.permute.xlu1 %524  ;;  %v2578_v3 = vpop.permute.xlu0 %519 }
  0xce   :  { %v1166_v5 = vmul.f32 %v525_v2, %v2546_v26  ;;  %844 = vperm.xlu1 %2086, %v174_v60   ;;  %839 = vperm.xlu0 %2085, %v173_v61   ;;  %v2062_v60 = vld [vmem:[%s3420_s3] ss:$0 sm:$0xff]  ;;  %v229_v61 = vld [vmem:[%s3419_s2 + $0x4f0] sm:$0xff] }
  0xd0   :  { %v1573_v1 = vsel %vm1567_vm3, %v1166_v5, 0.0 }
  0xd1   :  { %v1574_v6 = vadd.f32 %v1573_v1, %v1572_v14  ;;  %v2589_v10 = vpop.permute.xlu1 %534  ;;  %v2592_v12 = vpop.permute.xlu0 %529  ;;  %v2063_v1 = vld [vmem:[%s3420_s3 + $0x1] ss:$0 sm:$0xff] }
  0xd2   :  { %854 = vperm.xlu1 %2086, %v176_v0   ;;  %849 = vperm.xlu0 %2085, %v175_v7   ;;  %v2064_v7 = vld [vmem:[%s3420_s3 + $0x2] ss:$0 sm:$0xff] }
  0xd5   :  { %v545_v14 = vpop.permute.xlu1 %544  ;;  %v540_v23 = vpop.permute.xlu0 %539 }
  0xd6   :  { %v1170_v27 = vmul.f32 %v545_v14, %v2601_v21  ;;  %v1169_v28 = vmul.f32 %v540_v23, %v2601_v21  ;;  %869 = vperm.xlu1 %2086, %v179_v13   ;;  %859 = vperm.xlu0 %2085, %v177_v18   ;;  %v2034_v13 = vsel %vm28_vm7, 1.0, %v2119_v25  ;;  %v2066_v14 = vld [vmem:[%s3420_s3 + $0x4] ss:$0 sm:$0xff]  ;;  %v2065_v23 = vld [vmem:[%s3420_s3 + $0x3] ss:$0 sm:$0xff] }
  0xd8   :  { %v1388_v36 = vsel %vm1287_vm2, %v1170_v27, 0.0  ;;  %v1357_v38 = vsel %vm1287_vm2, %v1169_v28, 0.0  ;;  %v2656_v27 = vrot.slane %v2034_v13, %v2386_v22 }
  0xd9   :  { %v1389_v40 = vadd.f32 %v1388_v36, %v1387_v42  ;;  %v1358_v41 = vadd.f32 %v1357_v38, %v1356_v43  ;;  %v555_v44 = vpop.permute.xlu1 %554  ;;  %v550_v45 = vpop.permute.xlu0 %549  ;;  %v2068_v36 = vld [vmem:[%s3420_s3 + $0x6] ss:$0 sm:$0xff]  ;;  %v2067_v38 = vld [vmem:[%s3420_s3 + $0x5] ss:$0 sm:$0xff] }
  0xda   :  { %v1172_v46 = vmul.f32 %v555_v44, %v2601_v21  ;;  %v1171_v47 = vmul.f32 %v550_v45, %v2601_v21  ;;  %969 = vperm.xlu1 %2086, %v199_v31   ;;  %919 = vperm.xlu0 %2085, %v189_v34  }
  0xdc   :  { %v1450_v54 = vsel %vm1287_vm2, %v1172_v46, 0.0  ;;  %v1419_v42 = vsel %vm1287_vm2, %v1171_v47, 0.0 }
  0xdd   :  { %v1451_v43 = vadd.f32 %v1450_v54, %v1449_v49  ;;  %v1420_v48 = vadd.f32 %v1419_v42, %v1418_v55  ;;  %v565_v56 = vpop.permute.xlu1 %564  ;;  %v560_v57 = vpop.permute.xlu0 %559 }
  0xde   :  { %v1174_v50 = vmul.f32 %v565_v56, %v2601_v21  ;;  %v1173_v51 = vmul.f32 %v560_v57, %v2601_v21  ;;  %1069 = vperm.xlu1 %2086, %v219_v52   ;;  %1019 = vperm.xlu0 %2085, %v209_v53   ;;  %v2070_v56 = vld [vmem:[%s3420_s3 + $0x8] ss:$0 sm:$0xff]  ;;  %v2069_v57 = vld [vmem:[%s3420_s3 + $0x7] ss:$0 sm:$0xff] }
  0xe0   :  { %v1512_v62 = vsel %vm1287_vm2, %v1174_v50, 0.0  ;;  %v1481_v49 = vsel %vm1287_vm2, %v1173_v51, 0.0 }
  0xe1   :  { %v1513_v55 = vadd.f32 %v1512_v62, %v1511_v59  ;;  %v1482_v58 = vadd.f32 %v1481_v49, %v1480_v63  ;;  %v575_v2 = vpop.permute.xlu1 %574  ;;  %v2633_v5 = vpop.permute.xlu0 %569 }
  0xe2   :  { %v1176_v0 = vmul.f32 %v575_v2, %v2601_v21  ;;  %1754 = vperm.xlu1 %2086, %v2062_v60   ;;  %1119 = vperm.xlu0 %2085, %v229_v61   ;;  %v2072_v2 = vld [vmem:[%s3420_s3 + $0xa] ss:$0 sm:$0xff] }
  0xe4   :  { %v1575_v59 = vsel %vm1567_vm3, %v1176_v0, 0.0  ;;  %v2071_v0 = vld [vmem:[%s3420_s3 + $0x9] ss:$0 sm:$0xff] }
  0xe5   :  { %v1576_v63 = vadd.f32 %v1575_v59, %v1574_v6  ;;  %v2644_v11 = vpop.permute.xlu1 %584  ;;  %v2647_v18 = vpop.permute.xlu0 %579 }
  0xe6   :  { %1762 = vperm.xlu1 %2086, %v2064_v7   ;;  %1758 = vperm.xlu0 %2085, %v2063_v1  }
  0xe9   :  { %v595_v6 = vpop.permute.xlu1 %594  ;;  %v590_v28 = vpop.permute.xlu0 %589 }
  0xea   :  { %v1180_v31 = vmul.f32 %v595_v6, %v2656_v27  ;;  %v1179_v34 = vmul.f32 %v590_v28, %v2656_v27  ;;  %1770 = vperm.xlu1 %2086, %v2066_v14   ;;  %1766 = vperm.xlu0 %2085, %v2065_v23   ;;  %v2074_v23 = vld [vmem:[%s3420_s3 + $0xc] ss:$0 sm:$0xff]  ;;  %v2073_v6 = vld [vmem:[%s3420_s3 + $0xb] ss:$0 sm:$0xff] }
  0xec   :  { %v1390_v44 = vsel %vm1287_vm2, %v1180_v31, 0.0  ;;  %v1359_v45 = vsel %vm1287_vm2, %v1179_v34, 0.0  ;;  %v2035_v31 = vsel %vm29_vm8, 1.0, %v2119_v25 }
  0xed   :  { %v1391_v46 = vadd.f32 %v1390_v44, %v1389_v40  ;;  %v1360_v47 = vadd.f32 %v1359_v45, %v1358_v41  ;;  %v605_v52 = vpop.permute.xlu1 %604  ;;  %v600_v53 = vpop.permute.xlu0 %599  ;;  %v2711_v44 = vrot.slane %v2035_v31, %v2386_v22  ;;  %v183_v31 = vld [vmem:[%s3419_s2 + $0x380] sm:$0xff] }
  0xee   :  { %v1182_v54 = vmul.f32 %v605_v52, %v2656_v27  ;;  %v1181_v42 = vmul.f32 %v600_v53, %v2656_v27  ;;  %1778 = vperm.xlu1 %2086, %v2068_v36   ;;  %1774 = vperm.xlu0 %2085, %v2067_v38   ;;  %v2076_v36 = vld [vmem:[%s3420_s3 + $0xe] ss:$0 sm:$0xff]  ;;  %v2075_v38 = vld [vmem:[%s3420_s3 + $0xd] ss:$0 sm:$0xff] }
  0xf0   :  { %v1452_v50 = vsel %vm1287_vm2, %v1182_v54, 0.0  ;;  %v1421_v40 = vsel %vm1287_vm2, %v1181_v42, 0.0  ;;  %v2078_v54 = vld [vmem:[%s3420_s3 + $0x10] ss:$0 sm:$0xff]  ;;  %v2077_v42 = vld [vmem:[%s3420_s3 + $0xf] ss:$0 sm:$0xff] }
  0xf1   :  { %v1453_v41 = vadd.f32 %v1452_v50, %v1451_v43  ;;  %v1422_v51 = vadd.f32 %v1421_v40, %v1420_v48  ;;  %v615_v60 = vpop.permute.xlu1 %614  ;;  %v610_v61 = vpop.permute.xlu0 %609 }
  0xf2   :  { %v1184_v62 = vmul.f32 %v615_v60, %v2656_v27  ;;  %v1183_v49 = vmul.f32 %v610_v61, %v2656_v27  ;;  %1786 = vperm.xlu1 %2086, %v2070_v56   ;;  %1782 = vperm.xlu0 %2085, %v2069_v57  }
  0xf4   :  { %v1514_v7 = vsel %vm1287_vm2, %v1184_v62, 0.0  ;;  %v1483_v43 = vsel %vm1287_vm2, %v1183_v49, 0.0 }
  0xf5   :  { %v1515_v48 = vadd.f32 %v1514_v7, %v1513_v55  ;;  %v1484_v1 = vadd.f32 %v1483_v43, %v1482_v58  ;;  %v625_v59 = vpop.permute.xlu1 %624  ;;  %v2688_v13 = vpop.permute.xlu0 %619 }
  0xf6   :  { %v1186_v14 = vmul.f32 %v625_v59, %v2656_v27  ;;  %1794 = vperm.xlu1 %2086, %v2072_v2   ;;  %1790 = vperm.xlu0 %2085, %v2071_v0   ;;  %v182_v2 = vld [vmem:[%s3419_s2 + $0x378] sm:$0xff]  ;;  %v181_v0 = vld [vmem:[%s3419_s2 + $0x370] sm:$0xff] }
  0xf8   :  { %v1577_v55 = vsel %vm1567_vm3, %v1186_v14, 0.0 }
  0xf9   :  { %v1578_v58 = vadd.f32 %v1577_v55, %v1576_v63  ;;  %v2699_v28 = vpop.permute.xlu1 %634  ;;  %v2702_v34 = vpop.permute.xlu0 %629  ;;  %v191_v55 = vld [vmem:[%s3419_s2 + $0x3c0] sm:$0xff] }
  0xfa   :  { %1802 = vperm.xlu1 %2086, %v2074_v23   ;;  %1798 = vperm.xlu0 %2085, %v2073_v6  }
  0xfd   :  { %v645_v63 = vpop.permute.xlu1 %644  ;;  %v640_v45 = vpop.permute.xlu0 %639 }
  0xfe   :  { %v1190_v52 = vmul.f32 %v645_v63, %v2711_v44  ;;  %v1189_v53 = vmul.f32 %v640_v45, %v2711_v44  ;;  %1810 = vperm.xlu1 %2086, %v2076_v36   ;;  %1806 = vperm.xlu0 %2085, %v2075_v38  }
 0x100   :  { %v1392_v56 = vsel %vm1287_vm2, %v1190_v52, 0.0  ;;  %v1361_v57 = vsel %vm1287_vm2, %v1189_v53, 0.0  ;;  %v184_v53 = vld [vmem:[%s3419_s2 + $0x388] sm:$0xff] }
 0x101   :  { %v1393_v50 = vadd.f32 %v1392_v56, %v1391_v46  ;;  %v1362_v40 = vadd.f32 %v1361_v57, %v1360_v47  ;;  %v655_v60 = vpop.permute.xlu1 %654  ;;  %v650_v61 = vpop.permute.xlu0 %649  ;;  %v2036_v56 = vsel %vm30_vm9, 1.0, %v2119_v25 }
 0x102   :  { %v1192_v62 = vmul.f32 %v655_v60, %v2711_v44  ;;  %v1191_v49 = vmul.f32 %v650_v61, %v2711_v44  ;;  %1818 = vperm.xlu1 %2086, %v2078_v54   ;;  %1814 = vperm.xlu0 %2085, %v2077_v42   ;;  %v192_v54 = vld [vmem:[%s3419_s2 + $0x3c8] sm:$0xff]  ;;  %v201_v60 = vld [vmem:[%s3419_s2 + $0x410] sm:$0xff] }
 0x103   :  { %v193_v61 = vld [vmem:[%s3419_s2 + $0x3d0] sm:$0xff] }
 0x104   :  { %v1454_v7 = vsel %vm1287_vm2, %v1192_v62, 0.0  ;;  %v1423_v46 = vsel %vm1287_vm2, %v1191_v49, 0.0  ;;  %v2766_v62 = vrot.slane %v2036_v56, %v2386_v22 }
 0x105   :  { %v1455_v47 = vadd.f32 %v1454_v7, %v1453_v41  ;;  %v1424_v43 = vadd.f32 %v1423_v46, %v1422_v51  ;;  %v665_v59 = vpop.permute.xlu1 %664  ;;  %v660_v14 = vpop.permute.xlu0 %659  ;;  %v185_v7 = vld [vmem:[%s3419_s2 + $0x390] sm:$0xff]  ;;  %v202_v46 = vld [vmem:[%s3419_s2 + $0x418] sm:$0xff] }
 0x106   :  { %v1194_v23 = vmul.f32 %v665_v59, %v2711_v44  ;;  %v1193_v6 = vmul.f32 %v660_v14, %v2711_v44  ;;  %884 = vperm.xlu1 %2086, %v182_v2   ;;  %879 = vperm.xlu0 %2085, %v181_v0  }
 0x108   :  { %v1516_v36 = vsel %vm1287_vm2, %v1194_v23, 0.0  ;;  %v1485_v41 = vsel %vm1287_vm2, %v1193_v6, 0.0 }
 0x109   :  { %v1517_v51 = vadd.f32 %v1516_v36, %v1515_v48  ;;  %v1486_v38 = vadd.f32 %v1485_v41, %v1484_v1  ;;  %v675_v63 = vpop.permute.xlu1 %674  ;;  %v2743_v45 = vpop.permute.xlu0 %669 }
 0x10a   :  { %v1196_v52 = vmul.f32 %v675_v63, %v2711_v44  ;;  %929 = vperm.xlu1 %2086, %v191_v55   ;;  %889 = vperm.xlu0 %2085, %v183_v31   ;;  %v203_v63 = vld [vmem:[%s3419_s2 + $0x420] sm:$0xff] }
 0x10c   :  { %v1579_v48 = vsel %vm1567_vm3, %v1196_v52, 0.0  ;;  %v194_v52 = vld [vmem:[%s3419_s2 + $0x3d8] sm:$0xff] }
 0x10d   :  { %v1580_v1 = vadd.f32 %v1579_v48, %v1578_v58  ;;  %v2754_v42 = vpop.permute.xlu1 %684  ;;  %v2757_v57 = vpop.permute.xlu0 %679 }
 0x10e   :  { %894 = vperm.xlu1 %2086, %v184_v53   ;;  %934 = vperm.xlu0 %2085, %v192_v54  }
 0x111   :  { %v695_v58 = vpop.permute.xlu1 %694  ;;  %v690_v49 = vpop.permute.xlu0 %689 }
 0x112   :  { %v1200_v2 = vmul.f32 %v695_v58, %v2766_v62  ;;  %v1199_v0 = vmul.f32 %v690_v49, %v2766_v62  ;;  %979 = vperm.xlu1 %2086, %v201_v60   ;;  %939 = vperm.xlu0 %2085, %v193_v61   ;;  %v212_v58 = vld [vmem:[%s3419_s2 + $0x468] sm:$0xff]  ;;  %v211_v49 = vld [vmem:[%s3419_s2 + $0x460] sm:$0xff] }
 0x114   :  { %v1394_v59 = vsel %vm1287_vm2, %v1200_v2, 0.0  ;;  %v1363_v14 = vsel %vm1287_vm2, %v1199_v0, 0.0 }
 0x115   :  { %v2778_v23 = vadd.f32 %v1394_v59, %v1393_v50  ;;  %v2780_v6 = vadd.f32 %v1363_v14, %v1362_v40  ;;  %v705_v55 = vpop.permute.xlu1 %704  ;;  %v700_v31 = vpop.permute.xlu0 %699  ;;  %v1138_v59 = vmul.f32 %v2403_v30, %v2417_v37  ;;  %v1128_v30 = vmul.f32 %v2357_v8, %v2401_v29 }
 0x116   :  { %v1202_v36 = vmul.f32 %v705_v55, %v2766_v62  ;;  %v1201_v41 = vmul.f32 %v700_v31, %v2766_v62  ;;  %899 = vperm.xlu1 %2086, %v185_v7   ;;  %984 = vperm.xlu0 %2085, %v202_v46   ;;  %v1137_v55 = vmul.f32 %v2406_v32, %v2417_v37 }
 0x117   :  { %v1148_v31 = vmul.f32 %v2477_v33, %v2489_v39  ;;  %v1147_v8 = vmul.f32 %v2480_v35, %v2489_v39  ;;  %v1319_v35 = vsel %vm1287_vm2, %v1128_v30, 0.0  ;;  %v221_v30 = vld [vmem:[%s3419_s2 + $0x4b0] sm:$0xff] }
 0x118   :  { %v1456_v50 = vsel %vm1287_vm2, %v1202_v36, 0.0  ;;  %v1425_v40 = vsel %vm1287_vm2, %v1201_v41, 0.0  ;;  %v1127_v41 = vmul.f32 %v2349_v4, %v2401_v29  ;;  %v1289_v33 = vsel %vm1287_vm2, %v1137_v55, 0.0 }
 0x119   :  { %v2792_v53 = vadd.f32 %v1456_v50, %v1455_v47  ;;  %v2794_v54 = vadd.f32 %v1425_v40, %v1424_v43  ;;  %v715_v48 = vpop.permute.xlu1 %714  ;;  %v710_v56 = vpop.permute.xlu0 %709  ;;  %v1320_v40 = vsel %vm1287_vm2, %v1138_v59, 0.0  ;;  %v1158_v4 = vmul.f32 %v2534_v15, %v2546_v26 }
 0x11a   :  { %v1204_v60 = vmul.f32 %v715_v48, %v2766_v62  ;;  %v1203_v61 = vmul.f32 %v710_v56, %v2766_v62  ;;  %989 = vperm.xlu1 %2086, %v203_v63   ;;  %944 = vperm.xlu0 %2085, %v194_v52   ;;  %v2037_v52 = vsel %vm31_vm10, 1.0, %v2119_v25  ;;  %v213_v48 = vld [vmem:[%s3419_s2 + $0x470] sm:$0xff]  ;;  %v204_v56 = vld [vmem:[%s3419_s2 + $0x428] sm:$0xff]  ;;  %v1288_v15 = vsel %vm1287_vm2, %v1127_v41, 0.0 }
 0x11b   :  { %v1324_v55 = vsel %vm1287_vm2, %v1158_v4, 0.0 }
 0x11c   :  { %v1518_v47 = vsel %vm1287_vm2, %v1204_v60, 0.0  ;;  %v1487_v43 = vsel %vm1287_vm2, %v1203_v61, 0.0  ;;  %v1322_v60 = vsel %vm1287_vm2, %v1148_v31, 0.0  ;;  %v2855_v61 = vrot.slane %v2037_v52, %v2386_v22 }
 0x11d   :  { %v2806_v2 = vadd.f32 %v1518_v47, %v1517_v51  ;;  %v2808_v0 = vadd.f32 %v1487_v43, %v1486_v38  ;;  %v725_v7 = vpop.permute.xlu1 %724  ;;  %v2810_v46 = vpop.permute.xlu0 %719  ;;  %v195_v51 = vld [vmem:[%s3419_s2 + $0x3e0] sm:$0xff]  ;;  %v186_v38 = vld [vmem:[%s3419_s2 + $0x398] sm:$0xff]  ;;  %v1290_v47 = vadd.f32 %v1289_v33, %v1288_v15  ;;  %v1291_v43 = vsel %vm1287_vm2, %v1147_v8, 0.0 }
 0x11e   :  { %v1206_v14 = vmul.f32 %v725_v7, %v2766_v62  ;;  %1034 = vperm.xlu1 %2086, %v212_v58   ;;  %1029 = vperm.xlu0 %2085, %v211_v49   ;;  %v1321_v58 = vadd.f32 %v1320_v40, %v1319_v35  ;;  %v1168_v31 = vmul.f32 %v2589_v10, %v2601_v21  ;;  %v178_v15 = vld [vmem:[%s3419_s2 + $0x358] sm:$0xff] }
 0x11f   :  { %v1292_v40 = vadd.f32 %v1291_v43, %v1290_v47  ;;  %v1178_v8 = vmul.f32 %v2644_v11, %v2656_v27  ;;  %v1177_v10 = vmul.f32 %v2647_v18, %v2656_v27  ;;  %v2038_v11 = vsel %vm32_vm11, 1.0, %v2119_v25  ;;  %v187_v18 = vld [vmem:[%s3419_s2 + $0x3a0] sm:$0xff] }
 0x120   :  { %v1581_v36 = vsel %vm1567_vm3, %v1206_v14, 0.0  ;;  %v1323_v14 = vadd.f32 %v1322_v60, %v1321_v58  ;;  %v1187_v60 = vmul.f32 %v2702_v34, %v2711_v44  ;;  %v1326_v58 = vsel %vm1287_vm2, %v1168_v31, 0.0  ;;  %v205_v31 = vld [vmem:[%s3419_s2 + $0x430] sm:$0xff] }
 0x121   :  { %v2831_v32 = vadd.f32 %v1581_v36, %v1580_v1  ;;  %v2833_v63 = vpop.permute.xlu1 %734  ;;  %v2836_v50 = vpop.permute.xlu0 %729  ;;  %v1157_v1 = vmul.f32 %v2537_v19, %v2546_v26  ;;  %v1167_v36 = vmul.f32 %v2592_v12, %v2601_v21  ;;  %v1198_v34 = vmul.f32 %v2754_v42, %v2766_v62 }
 0x122   :  { %949 = vperm.xlu1 %2086, %v195_v51   ;;  %904 = vperm.xlu0 %2085, %v186_v38   ;;  %v222_v38 = vld [vmem:[%s3419_s2 + $0x4b8] sm:$0xff] }
 0x123   :  { %v1293_v51 = vsel %vm1287_vm2, %v1157_v1, 0.0  ;;  %v1295_v16 = vsel %vm1287_vm2, %v1167_v36, 0.0  ;;  %v1208_v36 = vmul.f32 %v2833_v63, %v2855_v61  ;;  %v1332_v63 = vsel %vm1287_vm2, %v1198_v34, 0.0 }
 0x124   :  { %v1294_v35 = vadd.f32 %v1293_v51, %v1292_v40 }
 0x125   :  { %v745_v49 = vpop.permute.xlu1 %744  ;;  %v740_v19 = vpop.permute.xlu0 %739 }
 0x126   :  { %v1210_v7 = vmul.f32 %v745_v49, %v2855_v61  ;;  %v1209_v59 = vmul.f32 %v740_v19, %v2855_v61  ;;  %1039 = vperm.xlu1 %2086, %v213_v48   ;;  %994 = vperm.xlu0 %2085, %v204_v56  }
 0x128   :  { %v1396_v41 = vsel %vm1287_vm2, %v1210_v7, 0.0  ;;  %v1365_v52 = vsel %vm1287_vm2, %v1209_v59, 0.0 }
 0x129   :  { %v2879_v33 = vadd.f32 %v1396_v41, %v2778_v23  ;;  %v2882_v4 = vadd.f32 %v1365_v52, %v2780_v6  ;;  %v755_v1 = vpop.permute.xlu1 %754  ;;  %v750_v48 = vpop.permute.xlu0 %749  ;;  %v1325_v23 = vadd.f32 %v1324_v55, %v1323_v14  ;;  %v1188_v6 = vmul.f32 %v2699_v28, %v2711_v44 }
 0x12a   :  { %v1212_v12 = vmul.f32 %v755_v1, %v2855_v61  ;;  %v1211_v56 = vmul.f32 %v750_v48, %v2855_v61  ;;  %1084 = vperm.xlu1 %2086, %v222_v38   ;;  %1079 = vperm.xlu0 %2085, %v221_v30   ;;  %v1328_v28 = vsel %vm1287_vm2, %v1178_v8, 0.0  ;;  %v1297_v14 = vsel %vm1287_vm2, %v1177_v10, 0.0 }
 0x12b   :  { %v1197_v55 = vmul.f32 %v2757_v57, %v2766_v62  ;;  %v1327_v42 = vadd.f32 %v1326_v58, %v1325_v23  ;;  %v1296_v30 = vadd.f32 %v1295_v16, %v1294_v35  ;;  %v196_v57 = vld [vmem:[%s3419_s2 + $0x3e8] sm:$0xff]  ;;  %v1207_v41 = vmul.f32 %v2836_v50, %v2855_v61 }
 0x12c   :  { %v1458_v49 = vsel %vm1287_vm2, %v1212_v12, 0.0  ;;  %v1427_v19 = vsel %vm1287_vm2, %v1211_v56, 0.0  ;;  %v2945_v35 = vrot.slane %v2038_v11, %v2386_v22 }
 0x12d   :  { %v2909_v47 = vadd.f32 %v1458_v49, %v2792_v53  ;;  %v2912_v43 = vadd.f32 %v1427_v19, %v2794_v54  ;;  %v765_v7 = vpop.permute.xlu1 %764  ;;  %v760_v59 = vpop.permute.xlu0 %759  ;;  %v1330_v53 = vsel %vm1287_vm2, %v1188_v6, 0.0  ;;  %v1299_v54 = vsel %vm1287_vm2, %v1187_v60, 0.0  ;;  %v214_v60 = vld [vmem:[%s3419_s2 + $0x478] sm:$0xff] }
 0x12e   :  { %v1214_v51 = vmul.f32 %v765_v7, %v2855_v61  ;;  %v1213_v38 = vmul.f32 %v760_v59, %v2855_v61  ;;  %909 = vperm.xlu1 %2086, %v187_v18   ;;  %864 = vperm.xlu0 %2085, %v178_v15   ;;  %v1329_v8 = vadd.f32 %v1328_v28, %v1327_v42  ;;  %v1301_v23 = vsel %vm1287_vm2, %v1197_v55, 0.0  ;;  %v197_v55 = vld [vmem:[%s3419_s2 + $0x3f0] sm:$0xff] }
 0x12f   :  { %v1298_v1 = vadd.f32 %v1297_v14, %v1296_v30  ;;  %v1334_v18 = vsel %vm1287_vm2, %v1208_v36, 0.0  ;;  %v1303_v15 = vsel %vm1287_vm2, %v1207_v41, 0.0  ;;  %v215_v36 = vld [vmem:[%s3419_s2 + $0x480] sm:$0xff]  ;;  %v206_v41 = vld [vmem:[%s3419_s2 + $0x438] sm:$0xff] }
 0x130   :  { %v1520_v52 = vsel %vm1287_vm2, %v1214_v51, 0.0  ;;  %v1489_v40 = vsel %vm1287_vm2, %v1213_v38, 0.0  ;;  %v1331_v6 = vadd.f32 %v1330_v53, %v1329_v8  ;;  %v188_v51 = vld [vmem:[%s3419_s2 + $0x3a8] sm:$0xff] }
 0x131   :  { %v2934_v48 = vadd.f32 %v1520_v52, %v2806_v2  ;;  %v2937_v10 = vadd.f32 %v1489_v40, %v2808_v0  ;;  %v775_v12 = vpop.permute.xlu1 %774  ;;  %v2939_v56 = vpop.permute.xlu0 %769  ;;  %v1300_v2 = vadd.f32 %v1299_v54, %v1298_v1  ;;  %v223_v0 = vld [vmem:[%s3419_s2 + $0x4c0] sm:$0xff] }
 0x132   :  { %v1216_v50 = vmul.f32 %v775_v12, %v2855_v61  ;;  %999 = vperm.xlu1 %2086, %v205_v31   ;;  %954 = vperm.xlu0 %2085, %v196_v57   ;;  %v1333_v16 = vadd.f32 %v1332_v63, %v1331_v6  ;;  %v198_v6 = vld [vmem:[%s3419_s2 + $0x3f8] sm:$0xff] }
 0x133   :  { %v1302_v49 = vadd.f32 %v1301_v23, %v1300_v2 }
 0x134   :  { %v1583_v58 = vsel %vm1567_vm3, %v1216_v50, 0.0  ;;  %v1335_v59 = vadd.f32 %v1334_v18, %v1333_v16  ;;  %v1145_v16 = vmul.f32 %v2465_v20, %v2417_v37  ;;  %v1155_v37 = vmul.f32 %v2523_v9, %v2489_v39  ;;  %v208_v9 = vld [vmem:[%s3419_s2 + $0x448] sm:$0xff] }
 0x135   :  { %v2957_v11 = vadd.f32 %v1583_v58, %v2831_v32  ;;  %v785_v19 = vpop.permute.xlu1 %784  ;;  %v780_v28 = vpop.permute.xlu0 %779  ;;  %v1304_v14 = vadd.f32 %v1303_v15, %v1302_v49 }
 0x136   :  { %v1218_v34 = vmul.f32 %v785_v19, %v2945_v35  ;;  %v1217_v7 = vmul.f32 %v780_v28, %v2945_v35  ;;  %1089 = vperm.xlu1 %2086, %v223_v0   ;;  %1044 = vperm.xlu0 %2085, %v214_v60   ;;  %v3002_v0 = vld [vmem:[%s3417_s0] sm:$0x1]  ;;  %v216_v28 = vld [vmem:[%s3419_s2 + $0x488] sm:$0xff] }
 0x137   :  { %vm33_vm12 = vcmp.eq.s32.totalorder %v3002_v0, 10  ;;  %vm35_vm13 = vcmp.eq.s32.totalorder %v3002_v0, 12  ;;  %vm34_vm14 = vcmp.eq.s32.totalorder %v3002_v0, 11  ;;  %vm37_vm15 = vcmp.eq.s32.totalorder %v3002_v0, 14 }
 0x138   :  { %v1336_v32 = vsel %vm1287_vm2, %v1218_v34, 0.0  ;;  %v1305_v38 = vsel %vm1287_vm2, %v1217_v7, 0.0  ;;  %v1135_v34 = vmul.f32 %v2390_v24, %v2401_v29  ;;  %v1165_v24 = vmul.f32 %v2578_v3, %v2546_v26 }
 0x139   :  { %v2969_v42 = vadd.f32 %v1336_v32, %v1335_v59  ;;  %v2971_v30 = vadd.f32 %v1305_v38, %v1304_v14  ;;  %v795_v53 = vpop.permute.xlu1 %794  ;;  %v790_v54 = vpop.permute.xlu0 %789  ;;  %v1537_v32 = vsel %vm1287_vm2, %v1145_v16, 0.0  ;;  %v1539_v38 = vsel %vm1287_vm2, %v1155_v37, 0.0 }
 0x13a   :  { %v1220_v31 = vmul.f32 %v795_v53, %v2945_v35  ;;  %v1219_v57 = vmul.f32 %v790_v54, %v2945_v35  ;;  %959 = vperm.xlu1 %2086, %v197_v55   ;;  %914 = vperm.xlu0 %2085, %v188_v51   ;;  %v1175_v26 = vmul.f32 %v2633_v5, %v2601_v21  ;;  %v226_v5 = vld [vmem:[%s3419_s2 + $0x4d8] sm:$0xff]  ;;  %v2041_v16 = vsel %vm35_vm13, 1.0, %v2119_v25 }
 0x13b   :  { %vm36_vm0 = vcmp.eq.s32.totalorder %v3002_v0, 13  ;;  %vm38_vm1 = vcmp.eq.s32.totalorder %v3002_v0, 15  ;;  %v220_v0 = vld [vmem:[%s3419_s2 + $0x4a8] sm:$0x3] }
 0x13c   :  { %v1398_v52 = vsel %vm1287_vm2, %v1220_v31, 0.0  ;;  %v1367_v40 = vsel %vm1287_vm2, %v1219_v57, 0.0 }
 0x13d   :  { %v2984_v8 = vadd.f32 %v1398_v52, %v2879_v33  ;;  %v2987_v1 = vadd.f32 %v1367_v40, %v2882_v4  ;;  %v805_v12 = vpop.permute.xlu1 %804  ;;  %v800_v63 = vpop.permute.xlu0 %799  ;;  %v224_v33 = vld [vmem:[%s3419_s2 + $0x4c8] sm:$0xff] }
 0x13e   :  { %v1222_v23 = vmul.f32 %v805_v12, %v2945_v35  ;;  %v1221_v50 = vmul.f32 %v800_v63, %v2945_v35  ;;  %1049 = vperm.xlu1 %2086, %v215_v36   ;;  %1004 = vperm.xlu0 %2085, %v206_v41   ;;  %v1541_v36 = vsel %vm1287_vm2, %v1165_v24, 0.0  ;;  %v1185_v41 = vmul.f32 %v2688_v13, %v2656_v27 }
 0x13f   :  { %v1543_v12 = vsel %vm1287_vm2, %v1175_v26, 0.0  ;;  %v1195_v27 = vmul.f32 %v2743_v45, %v2711_v44  ;;  %v1205_v44 = vmul.f32 %v2810_v46, %v2766_v62  ;;  %v1215_v46 = vmul.f32 %v2939_v56, %v2855_v61 }
 0x140   :  { %v1460_v2 = vsel %vm1287_vm2, %v1222_v23, 0.0  ;;  %v1429_v4 = vsel %vm1287_vm2, %v1221_v50, 0.0  ;;  %v3118_v24 = vrot.slane %v2041_v16, %v2386_v22 }
 0x141   :  { %v3006_v60 = vadd.f32 %v1460_v2, %v2909_v47  ;;  %v3009_v18 = vadd.f32 %v1429_v4, %v2912_v43  ;;  %v815_v15 = vpop.permute.xlu1 %814  ;;  %v810_v58 = vpop.permute.xlu0 %809  ;;  %v207_v47 = vld [vmem:[%s3419_s2 + $0x440] sm:$0xff]  ;;  %v2039_v43 = vsel %vm33_vm12, 1.0, %v2119_v25  ;;  %v1545_v4 = vsel %vm1287_vm2, %v1185_v41, 0.0  ;;  %v190_v41 = vld [vmem:[%s3419_s2 + $0x3b8] sm:$0x3] }
 0x142   :  { %v1224_v49 = vmul.f32 %v815_v15, %v2945_v35  ;;  %v1223_v19 = vmul.f32 %v810_v58, %v2945_v35  ;;  %964 = vperm.xlu1 %2086, %v198_v6   ;;  %1094 = vperm.xlu0 %2085, %v224_v33   ;;  %v3039_v39 = vrot.slane %v2039_v43, %v2386_v22  ;;  %v218_v58 = vld [vmem:[%s3419_s2 + $0x498] sm:$0xff]  ;;  %v1547_v62 = vsel %vm1287_vm2, %v1195_v27, 0.0 }
 0x144   :  { %v1522_v20 = vsel %vm1287_vm2, %v1224_v49, 0.0  ;;  %v1491_v7 = vsel %vm1287_vm2, %v1223_v19, 0.0 }
 0x145   :  { %v3029_v59 = vadd.f32 %v1522_v20, %v2934_v48  ;;  %v3032_v14 = vadd.f32 %v1491_v7, %v2937_v10  ;;  %v825_v55 = vpop.permute.xlu1 %824  ;;  %v820_v51 = vpop.permute.xlu0 %819  ;;  %v225_v48 = vld [vmem:[%s3419_s2 + $0x4d0] sm:$0xff]  ;;  %v1536_v10 = vsel %vm1287_vm2, %v1135_v34, 0.0  ;;  %v2040_v20 = vsel %vm34_vm14, 1.0, %v2119_v25 }
 0x146   :  { %v1226_v29 = vmul.f32 %v825_v55, %v2945_v35  ;;  %1054 = vperm.xlu1 %2086, %v216_v28   ;;  %1009 = vperm.xlu0 %2085, %v207_v47   ;;  %v1538_v53 = vadd.f32 %v1537_v32, %v1536_v10  ;;  %v1549_v7 = vsel %vm1287_vm2, %v1205_v44, 0.0  ;;  %v1225_v61 = vmul.f32 %v820_v51, %v2945_v35  ;;  %v228_v32 = vld [vmem:[%s3419_s2 + $0x4e8] sm:$0xff] }
 0x147   :  { %v1551_v35 = vsel %vm1287_vm2, %v1215_v46, 0.0 }
 0x148   :  { %v1585_v3 = vsel %vm1567_vm3, %v1226_v29, 0.0  ;;  %v1540_v21 = vadd.f32 %v1539_v38, %v1538_v53  ;;  %v1553_v53 = vsel %vm1287_vm2, %v1225_v61, 0.0 }
 0x149   :  { %v3053_v54 = vadd.f32 %v1585_v3, %v2957_v11  ;;  %v835_v31 = vpop.permute.xlu1 %834  ;;  %v830_v57 = vpop.permute.xlu0 %829  ;;  %v217_v11 = vld [vmem:[%s3419_s2 + $0x490] sm:$0xff]  ;;  %v3132_v3 = vrot.slane %v2040_v20, %v2386_v22 }
 0x14a   :  { %v1228_v52 = vmul.f32 %v835_v31, %v3039_v39  ;;  %v1227_v40 = vmul.f32 %v830_v57, %v3039_v39  ;;  %1014 = vperm.xlu1 %2086, %v208_v9   ;;  %1099 = vperm.xlu0 %2085, %v225_v48   ;;  %v1542_v23 = vadd.f32 %v1541_v36, %v1540_v21 }
 0x14c   :  { %v1338_v13 = vsel %vm1287_vm2, %v1228_v52, 0.0  ;;  %v1307_v63 = vsel %vm1287_vm2, %v1227_v40, 0.0  ;;  %v2042_v52 = vsel %vm36_vm0, 1.0, %v2119_v25 }
 0x14d   :  { %v3073_v50 = vadd.f32 %v1338_v13, %v2969_v42  ;;  %v3076_v6 = vadd.f32 %v1307_v63, %v2971_v30  ;;  %v845_v33 = vpop.permute.xlu1 %844  ;;  %v840_v2 = vpop.permute.xlu0 %839  ;;  %v1544_v42 = vadd.f32 %v1543_v12, %v1542_v23  ;;  %v227_v30 = vld [vmem:[%s3419_s2 + $0x4e0] sm:$0xff] }
 0x14e   :  { %v1230_v45 = vmul.f32 %v845_v33, %v3039_v39  ;;  %v1229_v15 = vmul.f32 %v840_v2, %v3039_v39  ;;  %1104 = vperm.xlu1 %2086, %v226_v5   ;;  %1059 = vperm.xlu0 %2085, %v217_v11   ;;  %v3161_v33 = vrot.slane %v2042_v52, %v2386_v22 }
 0x14f   :  { %v1546_v28 = vadd.f32 %v1545_v4, %v1544_v42  ;;  %v2044_v4 = vsel %vm38_vm1, 1.0, %v2119_v25 }
 0x150   :  { %v1400_v49 = vsel %vm1287_vm2, %v1230_v45, 0.0  ;;  %v1369_v19 = vsel %vm1287_vm2, %v1229_v15, 0.0 }
 0x151   :  { %v3099_v47 = vadd.f32 %v1400_v49, %v2984_v8  ;;  %v3102_v43 = vadd.f32 %v1369_v19, %v2987_v1  ;;  %v855_v34 = vpop.permute.xlu1 %854  ;;  %v850_v37 = vpop.permute.xlu0 %849  ;;  %v1548_v8 = vadd.f32 %v1547_v62, %v1546_v28  ;;  %v180_v1 = vld [vmem:[%s3419_s2 + $0x368] sm:$0x3]  ;;  %v3175_v62 = vrot.slane %v2044_v4, %v2386_v22  ;;  %v230_v49 = vld [vmem:[%s3419_s2 + $0x4f8] sm:$0x3] }
 0x152   :  { %v1232_v56 = vmul.f32 %v855_v34, %v3039_v39  ;;  %v1231_v55 = vmul.f32 %v850_v37, %v3039_v39  ;;  %1109 = vperm.xlu1 %2086, %v227_v30   ;;  %1064 = vperm.xlu0 %2085, %v218_v58  }
 0x153   :  { %v1550_v9 = vadd.f32 %v1549_v7, %v1548_v8 }
 0x154   :  { %v1462_v51 = vsel %vm1287_vm2, %v1232_v56, 0.0  ;;  %v1431_v29 = vsel %vm1287_vm2, %v1231_v55, 0.0 }
 0x155   :  { %v3126_v48 = vadd.f32 %v1462_v51, %v3006_v60  ;;  %v3129_v10 = vadd.f32 %v1431_v29, %v3009_v18  ;;  %v870_v38 = vpop.permute.xlu1 %869  ;;  %v860_v26 = vpop.permute.xlu0 %859  ;;  %v2043_v60 = vsel %vm37_vm15, 1.0, %v2119_v25  ;;  %v1552_v36 = vadd.f32 %v1551_v35, %v1550_v9  ;;  %v200_v18 = vld [vmem:[%s3419_s2 + $0x408] sm:$0x3] }
 0x156   :  { %v1235_v31 = vmul.f32 %v870_v38, %v3039_v39  ;;  %v1233_v57 = vmul.f32 %v860_v26, %v3039_v39  ;;  %874 = vperm.xlu1 %2086, %v180_v1   ;;  %1114 = vperm.xlu0 %2085, %v228_v32   ;;  %v3156_v13 = vrot.slane %v2043_v60, %v2386_v22 }
 0x157   :  { %v1554_v5 = vadd.f32 %v1553_v53, %v1552_v36 }
 0x158   :  { %v1555_v40 = vsel %vm1287_vm2, %v1235_v31, 0.0  ;;  %v1493_v21 = vsel %vm1287_vm2, %v1233_v57, 0.0 }
 0x159   :  { %v3153_v11 = vadd.f32 %v1493_v21, %v3032_v14  ;;  %v970_v12 = vpop.permute.xlu1 %969  ;;  %v920_v27 = vpop.permute.xlu0 %919  ;;  %v1556_v2 = vadd.f32 %v1555_v40, %v1554_v5  ;;  %v210_v14 = vld [vmem:[%s3419_s2 + $0x458] sm:$0x3] }
 0x15a   :  { %v1255_v63 = vmul.f32 %v970_v12, %v3118_v24  ;;  %v1245_v23 = vmul.f32 %v920_v27, %v3132_v3  ;;  %974 = vperm.xlu1 %2086, %v200_v18   ;;  %924 = vperm.xlu0 %2085, %v190_v41  }
 0x15c   :  { %v1557_v44 = vsel %vm1287_vm2, %v1245_v23, 0.0  ;;  %v1559_v30 = vsel %vm1287_vm2, %v1255_v63, 0.0 }
 0x15d   :  { %v1558_v45 = vadd.f32 %v1557_v44, %v1556_v2  ;;  %v1070_v15 = vpop.permute.xlu1 %1069  ;;  %v1020_v42 = vpop.permute.xlu0 %1019 }
 0x15e   :  { %v1275_v58 = vmul.f32 %v1070_v15, %v3156_v13  ;;  %v1265_v16 = vmul.f32 %v1020_v42, %v3161_v33  ;;  %1074 = vperm.xlu1 %2086, %v220_v0   ;;  %1024 = vperm.xlu0 %2085, %v210_v14  }
 0x15f   :  { %v1560_v46 = vadd.f32 %v1559_v30, %v1558_v45 }
 0x160   :  { %v1561_v19 = vsel %vm1287_vm2, %v1265_v16, 0.0  ;;  %v1563_v20 = vsel %vm1287_vm2, %v1275_v58, 0.0 }
 0x161   :  { %v1562_v28 = vadd.f32 %v1561_v19, %v1560_v46  ;;  %v1755_v34 = vpop.permute.xlu1 %1754  ;;  %v1120_v37 = vpop.permute.xlu0 %1119 }
 0x162   :  { %v1285_v7 = vmul.f32 %v1120_v37, %v3175_v62  ;;  %1124 = vperm.xlu0 %2085, %v230_v49  }
 0x163   :  { %v1564_v61 = vadd.f32 %v1563_v20, %v1562_v28 }
 0x164   :  { %v1565_v56 = vsel %vm1287_vm2, %v1285_v7, 0.0 }
 0x165   :  { %v1566_v55 = vadd.f32 %v1565_v56, %v1564_v61  ;;  %v1763_v8 = vpop.permute.xlu1 %1762  ;;  %v1759_v1 = vpop.permute.xlu0 %1758 }
 0x167   :  { %v2080_v32 = vtrunc.f32 %v1566_v55 }
 0x169   :  { %v3184_v35 = vcvt.f32.s32 %v2080_v32  ;;  %v1771_v51 = vpop.permute.xlu1 %1770  ;;  %v1767_v29 = vpop.permute.xlu0 %1766 }
 0x16b   :  { %vm1602_vm4 = vcmp.eq.s32.totalorder %v3184_v35, 2  ;;  %vm1600_vm5 = vcmp.eq.s32.totalorder %v3184_v35, 0  ;;  %vm1601_vm6 = vcmp.eq.s32.totalorder %v3184_v35, 1  ;;  %vm1604_vm7 = vcmp.eq.s32.totalorder %v3184_v35, 4 }
 0x16c   :  { %v2047_v9 = vsel %vm1602_vm4, 1.0, %v2119_v25  ;;  %v2045_v38 = vsel %vm1600_vm5, 1.0, %v2119_v25  ;;  %v2046_v26 = vsel %vm1601_vm6, 1.0, %v2119_v25  ;;  %v2049_v18 = vsel %vm1604_vm7, 1.0, %v2119_v25 }
 0x16d   :  { %v1823_v53 = vmul.f32 %v2047_v9, %v1763_v8  ;;  %v1821_v31 = vmul.f32 %v2045_v38, %v1755_v34  ;;  %v1822_v57 = vmul.f32 %v2046_v26, %v1759_v1  ;;  %v1779_v60 = vpop.permute.xlu1 %1778  ;;  %v1775_v36 = vpop.permute.xlu0 %1774  ;;  %vm1603_vm8 = vcmp.eq.s32.totalorder %v3184_v35, 3 }
 0x16e   :  { %vm1605_vm9 = vcmp.eq.s32.totalorder %v3184_v35, 5  ;;  %vm1606_vm10 = vcmp.eq.s32.totalorder %v3184_v35, 6  ;;  %v2048_v21 = vsel %vm1603_vm8, 1.0, %v2119_v25  ;;  %v1825_v27 = vmul.f32 %v2049_v18, %v1771_v51 }
 0x16f   :  { %v1838_v41 = vsel %vm1287_vm2, %v1821_v31, 0.0  ;;  %v1839_v52 = vsel %vm1287_vm2, %v1822_v57, 0.0  ;;  %v2050_v5 = vsel %vm1605_vm9, 1.0, %v2119_v25  ;;  %v1841_v12 = vsel %vm1287_vm2, %v1823_v53, 0.0 }
 0x170   :  { %v1840_v40 = vadd.f32 %v1839_v52, %v1838_v41  ;;  %v1824_v63 = vmul.f32 %v2048_v21, %v1767_v29  ;;  %v2051_v14 = vsel %vm1606_vm10, 1.0, %v2119_v25  ;;  %v1826_v44 = vmul.f32 %v2050_v5, %v1775_v36 }
 0x171   :  { %v1787_v23 = vpop.permute.xlu1 %1786  ;;  %v1783_v2 = vpop.permute.xlu0 %1782  ;;  %vm1607_vm11 = vcmp.eq.s32.totalorder %v3184_v35, 7  ;;  %v1845_v15 = vsel %vm1287_vm2, %v1825_v27, 0.0  ;;  %v1827_v42 = vmul.f32 %v2051_v14, %v1779_v60  ;;  %vm1608_vm12 = vcmp.eq.s32.totalorder %v3184_v35, 8 }
 0x172   :  { %v1842_v0 = vadd.f32 %v1841_v12, %v1840_v40  ;;  %v1843_v4 = vsel %vm1287_vm2, %v1824_v63, 0.0  ;;  %v2052_v46 = vsel %vm1607_vm11, 1.0, %v2119_v25  ;;  %v1847_v49 = vsel %vm1287_vm2, %v1826_v44, 0.0 }
 0x173   :  { %v1828_v19 = vmul.f32 %v2052_v46, %v1783_v2  ;;  %vm1609_vm13 = vcmp.eq.s32.totalorder %v3184_v35, 9  ;;  %v2053_v34 = vsel %vm1608_vm12, 1.0, %v2119_v25  ;;  %v1849_v37 = vsel %vm1287_vm2, %v1827_v42, 0.0 }
 0x174   :  { %v1844_v45 = vadd.f32 %v1843_v4, %v1842_v0  ;;  %v1829_v20 = vmul.f32 %v2053_v34, %v1787_v23  ;;  %vm1610_vm14 = vcmp.eq.s32.totalorder %v3184_v35, 10  ;;  %v2054_v55 = vsel %vm1609_vm13, 1.0, %v2119_v25 }
 0x175   :  { %v1795_v30 = vpop.permute.xlu1 %1794  ;;  %v1791_v58 = vpop.permute.xlu0 %1790  ;;  %v1851_v8 = vsel %vm1287_vm2, %v1828_v19, 0.0  ;;  %vm1611_vm15 = vcmp.eq.s32.totalorder %v3184_v35, 11  ;;  %v2055_v51 = vsel %vm1610_vm14, 1.0, %v2119_v25  ;;  %vm1612_vm0 = vcmp.eq.s32.totalorder %v3184_v35, 12 }
 0x176   :  { %v1846_v16 = vadd.f32 %v1845_v15, %v1844_v45  ;;  %v1830_v1 = vmul.f32 %v2054_v55, %v1791_v58  ;;  %v1853_v29 = vsel %vm1287_vm2, %v1829_v20, 0.0  ;;  %v1831_v9 = vmul.f32 %v2055_v51, %v1795_v30 }
 0x177   :  { %v2056_v31 = vsel %vm1611_vm15, 1.0, %v2119_v25  ;;  %vm1613_vm1 = vcmp.eq.s32.totalorder %v3184_v35, 13  ;;  %v2057_v18 = vsel %vm1612_vm0, 1.0, %v2119_v25  ;;  %vm1614_vm4 = vcmp.eq.s32.totalorder %v3184_v35, 14 }
 0x178   :  { %v1848_v28 = vadd.f32 %v1847_v49, %v1846_v16  ;;  %v1855_v57 = vsel %vm1287_vm2, %v1830_v1, 0.0  ;;  %v1857_v41 = vsel %vm1287_vm2, %v1831_v9, 0.0  ;;  %v2058_v12 = vsel %vm1613_vm1, 1.0, %v2119_v25 }
 0x179   :  { %v1803_v7 = vpop.permute.xlu1 %1802  ;;  %v1799_v61 = vpop.permute.xlu0 %1798  ;;  %vm1615_vm5 = vcmp.eq.s32.totalorder %v3184_v35, 15  ;;  %v2059_v2 = vsel %vm1614_vm4, 1.0, %v2119_v25  ;;  %vm1616_vm6 = vcmp.eq.s32.totalorder %v3184_v35, 16  ;;  %vm1873_vm7 = vcmp.eq.s32.totalorder %v2376_v17, 0 }
 0x17a   :  { %v1850_v56 = vadd.f32 %v1849_v37, %v1848_v28  ;;  %v1832_v60 = vmul.f32 %v2056_v31, %v1799_v61  ;;  %v1833_v52 = vmul.f32 %v2057_v18, %v1803_v7  ;;  %v2060_v15 = vsel %vm1615_vm5, 1.0, %v2119_v25  ;;  %v2079_v7 = vld [vmem:[%s3418_s1] ss:$0 sm:$0xff] }
 0x17b   :  { %v2061_v16 = vsel %vm1616_vm6, 1.0, %v2119_v25 }
 0x17c   :  { %v1852_v32 = vadd.f32 %v1851_v8, %v1850_v56  ;;  %v1859_v27 = vsel %vm1287_vm2, %v1832_v60, 0.0  ;;  %v1861_v0 = vsel %vm1287_vm2, %v1833_v52, 0.0 }
 0x17d   :  { %v1811_v38 = vpop.permute.xlu1 %1810  ;;  %v1807_v26 = vpop.permute.xlu0 %1806 }
 0x17e   :  { %v1854_v53 = vadd.f32 %v1853_v29, %v1852_v32  ;;  %v1834_v63 = vmul.f32 %v2058_v12, %v1807_v26  ;;  %v1835_v14 = vmul.f32 %v2059_v2, %v1811_v38 }
 0x180   :  { %v1856_v36 = vadd.f32 %v1855_v57, %v1854_v53  ;;  %v1863_v42 = vsel %vm1287_vm2, %v1834_v63, 0.0  ;;  %v1865_v46 = vsel %vm1287_vm2, %v1835_v14, 0.0 }
 0x181   :  { %v1819_v40 = vpop.permute.xlu1 %1818  ;;  %v1815_v21 = vpop.permute.xlu0 %1814 }
 0x182   :  { %v1858_v5 = vadd.f32 %v1857_v41, %v1856_v36  ;;  %v1836_v30 = vmul.f32 %v2060_v15, %v1815_v21  ;;  %v1837_v49 = vmul.f32 %v2061_v16, %v1819_v40 }
 0x184   :  { %v1860_v23 = vadd.f32 %v1859_v27, %v1858_v5  ;;  %v1867_v37 = vsel %vm1287_vm2, %v1836_v30, 0.0  ;;  %v1869_v20 = vsel %vm1287_vm2, %v1837_v49, 0.0 }
 0x185   :  { %v885_v4 = vpop.permute.xlu1 %884  ;;  %v880_v44 = vpop.permute.xlu0 %879 }
 0x186   :  { %v1862_v45 = vadd.f32 %v1861_v0, %v1860_v23  ;;  %v1238_v41 = vmul.f32 %v885_v4, %v3132_v3  ;;  %v1237_v52 = vmul.f32 %v880_v44, %v3132_v3 }
 0x188   :  { %v1864_v58 = vadd.f32 %v1863_v42, %v1862_v45  ;;  %v1340_v63 = vsel %vm1287_vm2, %v1238_v41, 0.0  ;;  %v1309_v23 = vsel %vm1287_vm2, %v1237_v52, 0.0 }
 0x189   :  { %v930_v19 = vpop.permute.xlu1 %929  ;;  %v890_v28 = vpop.permute.xlu0 %889  ;;  %v1341_v42 = vadd.f32 %v1340_v63, %v3073_v50  ;;  %v1310_v30 = vadd.f32 %v1309_v23, %v3076_v6  ;;  %v1898_v50 = vsub.s32 1, %v2376_v17 }
 0x18a   :  { %v1866_v34 = vadd.f32 %v1865_v46, %v1864_v58  ;;  %v1247_v40 = vmul.f32 %v930_v19, %v3118_v24 }
 0x18c   :  { %v1868_v35 = vadd.f32 %v1867_v37, %v1866_v34  ;;  %v1311_v14 = vsel %vm1287_vm2, %v1247_v40, 0.0 }
 0x18d   :  { %v3241_v61 = vpop.permute.xlu1 %894  ;;  %v935_v25 = vpop.permute.xlu0 %934  ;;  %v1312_v19 = vadd.f32 %v1311_v14, %v1310_v30 }
 0x18e   :  { %v1870_v56 = vadd.f32 %v1869_v20, %v1868_v35  ;;  %v1248_v21 = vmul.f32 %v935_v25, %v3118_v24 }
 0x190   :  { %v1881_v55 = vsel %vm1873_vm7, %v2079_v7, %v1870_v56  ;;  %v1342_v4 = vsel %vm1287_vm2, %v1248_v21, 0.0 }
 0x191   :  { %v1882_v8 = vsel %vm1287_vm2, %v1881_v55, 0.0  ;;  %v980_v1 = vpop.permute.xlu1 %979  ;;  %v940_v32 = vpop.permute.xlu0 %939  ;;  %v1343_v34 = vadd.f32 %v1342_v4, %v1341_v42 }
 0x192   :  { %v1883_v51 = vrot.slane %v1882_v8, 4  ;;  %v1257_v2 = vmul.f32 %v980_v1, %v3161_v33 }
 0x194   :  { %v1884_v29 = vadd.f32 %v1883_v51, %v1882_v8  ;;  %v1313_v46 = vsel %vm1287_vm2, %v1257_v2, 0.0  ;;  %v1239_v8 = vmul.f32 %v890_v28, %v3132_v3 }
 0x195   :  { %v3244_v9 = vpop.permute.xlu1 %899  ;;  %v985_v38 = vpop.permute.xlu0 %984  ;;  %v1314_v7 = vadd.f32 %v1313_v46, %v1312_v19  ;;  %v1240_v19 = vmul.f32 %v3241_v61, %v3132_v3 }
 0x196   :  { %v1885_v26 = vrot.slane %v1884_v29, 2  ;;  %v1258_v0 = vmul.f32 %v985_v38, %v3161_v33  ;;  %v1371_v40 = vsel %vm1287_vm2, %v1239_v8, 0.0  ;;  %v1241_v61 = vmul.f32 %v3244_v9, %v3132_v3 }
 0x197   :  { %v1372_v2 = vadd.f32 %v1371_v40, %v3102_v43  ;;  %v1402_v8 = vsel %vm1287_vm2, %v1240_v19, 0.0  ;;  %v1918_v19 = vsub.s32 6, %v2376_v17 }
 0x198   :  { %v1886_v53 = vadd.f32 %v1885_v26, %v1884_v29  ;;  %v1344_v49 = vsel %vm1287_vm2, %v1258_v0, 0.0  ;;  %v1249_v26 = vmul.f32 %v940_v32, %v3118_v24 }
 0x199   :  { %v990_v31 = vpop.permute.xlu1 %989  ;;  %v3246_v57 = vpop.permute.xlu0 %944  ;;  %v1345_v25 = vadd.f32 %v1344_v49, %v1343_v34 }
 0x19a   :  { %v1887_v60 = vrot.slane %v1886_v53, 1  ;;  %v1259_v21 = vmul.f32 %v990_v31, %v3161_v33  ;;  %v1373_v63 = vsel %vm1287_vm2, %v1249_v26, 0.0 }
 0x19c   :  { %v1888_v5 = vadd.f32 %v1887_v60, %v1886_v53 }
 0x19d   :  { %v1035_v36 = vpop.permute.xlu1 %1034  ;;  %v1030_v18 = vpop.permute.xlu0 %1029 }
 0x19e   :  { %v1268_v44 = vmul.f32 %v1035_v36, %v3156_v13  ;;  %v1267_v45 = vmul.f32 %v1030_v18, %v3156_v13  ;;  %v1890_v15 = vmul.f32 0.125, %v1888_v5 }
 0x1a0   :  { %v1346_v37 = vsel %vm1287_vm2, %v1268_v44, 0.0  ;;  %v1315_v35 = vsel %vm1287_vm2, %v1267_v45, 0.0  ;;  %v3270_v20 = vsub.f32 %v1881_v55, %v1890_v15  ;;  %v1375_v44 = vsel %vm1287_vm2, %v1259_v21, 0.0 }
 0x1a1   :  { %v3252_v12 = vpop.permute.xlu1 %949  ;;  %v3254_v27 = vpop.permute.xlu0 %904  ;;  %v1347_v29 = vadd.f32 %v1346_v37, %v1345_v25  ;;  %v1316_v38 = vadd.f32 %v1315_v35, %v1314_v7  ;;  %v1374_v45 = vadd.f32 %v1373_v63, %v1372_v2  ;;  %v1250_v35 = vmul.f32 %v3246_v57, %v3118_v24 }
 0x1a2   :  { %v1899_v36 = vrot.slane %v3270_v20, %v1898_v50  ;;  %v1895_v41 = vrot.slane %v3270_v20, %v2386_v22  ;;  %v1403_v57 = vadd.f32 %v1402_v8, %v3099_v47  ;;  %v1251_v9 = vmul.f32 %v3252_v12, %v3118_v24 }
 0x1a3   :  { %v1376_v46 = vadd.f32 %v1375_v44, %v1374_v45  ;;  %v1242_v47 = vmul.f32 %v3254_v27, %v3132_v3  ;;  %v1910_v12 = vsub.s32 4, %v2376_v17  ;;  %v1914_v44 = vsub.s32 5, %v2376_v17 }
 0x1a4   :  { %v1435_v45 = vsel %vm1287_vm2, %v1251_v9, 0.0 }
 0x1a5   :  { %v1040_v58 = vpop.permute.xlu1 %1039  ;;  %v995_v16 = vpop.permute.xlu0 %994 }
 0x1a6   :  { %v1269_v23 = vmul.f32 %v1040_v58, %v3156_v13  ;;  %v1902_v58 = vsub.s32 2, %v2376_v17 }
 0x1a8   :  { %v1377_v42 = vsel %vm1287_vm2, %v1269_v23, 0.0  ;;  %v1903_v50 = vrot.slane %v3270_v20, %v1902_v58 }
 0x1a9   :  { %v1085_v56 = vpop.permute.xlu1 %1084  ;;  %v1080_v6 = vpop.permute.xlu0 %1079  ;;  %v1378_v37 = vadd.f32 %v1377_v42, %v1376_v46  ;;  %v1464_v42 = vsel %vm1287_vm2, %v1242_v47, 0.0 }
 0x1aa   :  { %v1278_v1 = vmul.f32 %v1085_v56, %v3175_v62  ;;  %v1277_v51 = vmul.f32 %v1080_v6, %v3175_v62 }
 0x1ac   :  { %v1348_v53 = vsel %vm1287_vm2, %v1278_v1, 0.0  ;;  %v1317_v55 = vsel %vm1287_vm2, %v1277_v51, 0.0  ;;  %v1260_v1 = vmul.f32 %v995_v16, %v3161_v33  ;;  %v1433_v16 = vsel %vm1287_vm2, %v1241_v61, 0.0 }
 0x1ad   :  { %v1349_v60 = vadd.f32 %v1348_v53, %v1347_v29  ;;  %v1318_v18 = vadd.f32 %v1317_v55, %v1316_v38  ;;  %v3282_v28 = vpop.permute.xlu1 %909  ;;  %v3284_v52 = vpop.permute.xlu0 %864  ;;  %v1404_v29 = vsel %vm1287_vm2, %v1250_v35, 0.0 }
 0x1af   :  { %v1925_v32 = vmul.f32 %v1899_v36, %v1349_v60  ;;  %v1924_v5 = vmul.f32 %v1895_v41, %v1318_v18  ;;  %v1406_v60 = vsel %vm1287_vm2, %v1260_v1, 0.0  ;;  %v1405_v36 = vadd.f32 %v1404_v29, %v1403_v57 }
 0x1b1   :  { %v1933_v0 = vmul.f32 %v1925_v32, %v3270_v20  ;;  %v1932_v22 = vmul.f32 %v1924_v5, %v3270_v20  ;;  %v1000_v14 = vpop.permute.xlu1 %999  ;;  %v955_v4 = vpop.permute.xlu0 %954  ;;  %v1407_v21 = vadd.f32 %v1406_v60, %v1405_v36  ;;  %v1906_v5 = vsub.s32 3, %v2376_v17 }
 0x1b2   :  { %v1261_v23 = vmul.f32 %v1000_v14, %v3161_v33  ;;  %v1252_v27 = vmul.f32 %v955_v4, %v3118_v24  ;;  %v1243_v14 = vmul.f32 %v3282_v28, %v3132_v3  ;;  %v1911_v28 = vrot.slane %v3270_v20, %v1910_v12 }
 0x1b3   :  { %v1941_v15 = vsel %vm1287_vm2, %v1933_v0, 0.0  ;;  %v1940_v31 = vsel %vm1287_vm2, %v1932_v22, 0.0  ;;  %v1434_v0 = vadd.f32 %v1433_v16, %v3129_v10  ;;  %v1907_v10 = vrot.slane %v3270_v20, %v1906_v5 }
 0x1b4   :  { %v1942_v30 = vadd.f32 %v1941_v15, %v1940_v31  ;;  %v1495_v8 = vsel %vm1287_vm2, %v1243_v14, 0.0 }
 0x1b5   :  { %v1090_v43 = vpop.permute.xlu1 %1089  ;;  %v1045_v49 = vpop.permute.xlu0 %1044 }
 0x1b6   :  { %v1279_v34 = vmul.f32 %v1090_v43, %v3175_v62  ;;  %v1270_v38 = vmul.f32 %v1045_v49, %v3156_v13  ;;  %v1234_v43 = vmul.f32 %v3284_v52, %v3039_v39  ;;  %v1437_v49 = vsel %vm1287_vm2, %v1261_v23, 0.0 }
 0x1b8   :  { %v1379_v7 = vsel %vm1287_vm2, %v1279_v34, 0.0  ;;  %v1408_v40 = vsel %vm1287_vm2, %v1270_v38, 0.0  ;;  %v1436_v34 = vadd.f32 %v1435_v45, %v1434_v0  ;;  %v1524_v38 = vsel %vm1287_vm2, %v1234_v43, 0.0 }
 0x1b9   :  { %v1380_v25 = vadd.f32 %v1379_v7, %v1378_v37  ;;  %v960_v56 = vpop.permute.xlu1 %959  ;;  %v915_v6 = vpop.permute.xlu0 %914  ;;  %v1409_v22 = vadd.f32 %v1408_v40, %v1407_v21  ;;  %v1465_v7 = vadd.f32 %v1464_v42, %v3126_v48  ;;  %v1496_v40 = vadd.f32 %v1495_v8, %v3153_v11 }
 0x1ba   :  { %v1253_v37 = vmul.f32 %v960_v56, %v3118_v24  ;;  %v1438_v1 = vadd.f32 %v1437_v49, %v1436_v34 }
 0x1bb   :  { %v1926_v51 = vmul.f32 %v1903_v50, %v1380_v25  ;;  %v1466_v25 = vsel %vm1287_vm2, %v1252_v27, 0.0 }
 0x1bd   :  { %v1934_v26 = vmul.f32 %v1926_v51, %v3270_v20  ;;  %v1050_v53 = vpop.permute.xlu1 %1049  ;;  %v1005_v55 = vpop.permute.xlu0 %1004  ;;  %v1244_v51 = vmul.f32 %v915_v6, %v3132_v3 }
 0x1be   :  { %v1271_v15 = vmul.f32 %v1050_v53, %v3156_v13  ;;  %v1262_v4 = vmul.f32 %v1005_v55, %v3161_v33  ;;  %v1467_v53 = vadd.f32 %v1466_v25, %v1465_v7  ;;  %v1497_v55 = vsel %vm1287_vm2, %v1253_v37, 0.0 }
 0x1bf   :  { %v1943_v18 = vsel %vm1287_vm2, %v1934_v26, 0.0  ;;  %v1526_v47 = vsel %vm1287_vm2, %v1244_v51, 0.0  ;;  %v1498_v12 = vadd.f32 %v1497_v55, %v1496_v40  ;;  %v1919_v51 = vrot.slane %v3270_v20, %v1918_v19 }
 0x1c0   :  { %v1944_v41 = vadd.f32 %v1943_v18, %v1942_v30  ;;  %v1439_v50 = vsel %vm1287_vm2, %v1271_v15, 0.0  ;;  %v1468_v57 = vsel %vm1287_vm2, %v1262_v4, 0.0 }
 0x1c1   :  { %v965_v32 = vpop.permute.xlu1 %964  ;;  %v1095_v63 = vpop.permute.xlu0 %1094  ;;  %v1440_v60 = vadd.f32 %v1439_v50, %v1438_v1  ;;  %v1469_v21 = vadd.f32 %v1468_v57, %v1467_v53  ;;  %v1922_v50 = vsub.s32 7, %v2376_v17 }
 0x1c2   :  { %v1280_v2 = vmul.f32 %v1095_v63, %v3175_v62  ;;  %v1254_v6 = vmul.f32 %v965_v32, %v3118_v24  ;;  %v1525_v32 = vadd.f32 %v1524_v38, %v3029_v59 }
 0x1c3   :  { %v1923_v19 = vrot.slane %v3270_v20, %v1922_v50 }
 0x1c4   :  { %v1410_v31 = vsel %vm1287_vm2, %v1280_v2, 0.0  ;;  %v1528_v11 = vsel %vm1287_vm2, %v1254_v6, 0.0  ;;  %v1527_v14 = vadd.f32 %v1526_v47, %v1525_v32 }
 0x1c5   :  { %v1411_v30 = vadd.f32 %v1410_v31, %v1409_v22  ;;  %v1055_v46 = vpop.permute.xlu1 %1054  ;;  %v1010_v58 = vpop.permute.xlu0 %1009  ;;  %v1915_v31 = vrot.slane %v3270_v20, %v1914_v44 }
 0x1c6   :  { %v1272_v52 = vmul.f32 %v1055_v46, %v3156_v13  ;;  %v1263_v48 = vmul.f32 %v1010_v58, %v3161_v33  ;;  %v1529_v34 = vadd.f32 %v1528_v11, %v1527_v14 }
 0x1c7   :  { %v1927_v35 = vmul.f32 %v1907_v10, %v1411_v30 }
 0x1c8   :  { %v1470_v16 = vsel %vm1287_vm2, %v1272_v52, 0.0  ;;  %v1499_v2 = vsel %vm1287_vm2, %v1263_v48, 0.0 }
 0x1c9   :  { %v1935_v61 = vmul.f32 %v1927_v35, %v3270_v20  ;;  %v1015_v29 = vpop.permute.xlu1 %1014  ;;  %v1100_v56 = vpop.permute.xlu0 %1099  ;;  %v1471_v45 = vadd.f32 %v1470_v16, %v1469_v21  ;;  %v1500_v30 = vadd.f32 %v1499_v2, %v1498_v12 }
 0x1ca   :  { %v1281_v26 = vmul.f32 %v1100_v56, %v3175_v62  ;;  %v1264_v0 = vmul.f32 %v1015_v29, %v3161_v33 }
 0x1cb   :  { %v1945_v36 = vsel %vm1287_vm2, %v1935_v61, 0.0 }
 0x1cc   :  { %v1946_v18 = vadd.f32 %v1945_v36, %v1944_v41  ;;  %v1441_v9 = vsel %vm1287_vm2, %v1281_v26, 0.0  ;;  %v1530_v59 = vsel %vm1287_vm2, %v1264_v0, 0.0 }
 0x1cd   :  { %v1442_v5 = vadd.f32 %v1441_v9, %v1440_v60  ;;  %v1105_v63 = vpop.permute.xlu1 %1104  ;;  %v1060_v23 = vpop.permute.xlu0 %1059  ;;  %v1531_v52 = vadd.f32 %v1530_v59, %v1529_v34 }
 0x1ce   :  { %v1282_v22 = vmul.f32 %v1105_v63, %v3175_v62  ;;  %v1273_v41 = vmul.f32 %v1060_v23, %v3156_v13 }
 0x1cf   :  { %v1928_v27 = vmul.f32 %v1911_v28, %v1442_v5 }
 0x1d0   :  { %v1472_v15 = vsel %vm1287_vm2, %v1282_v22, 0.0  ;;  %v1501_v42 = vsel %vm1287_vm2, %v1273_v41, 0.0 }
 0x1d1   :  { %v1936_v10 = vmul.f32 %v1928_v27, %v3270_v20  ;;  %v1473_v46 = vadd.f32 %v1472_v15, %v1471_v45  ;;  %v1110_v58 = vpop.permute.xlu1 %1109  ;;  %v1065_v43 = vpop.permute.xlu0 %1064  ;;  %v1502_v44 = vadd.f32 %v1501_v42, %v1500_v30 }
 0x1d2   :  { %v1283_v49 = vmul.f32 %v1110_v58, %v3175_v62  ;;  %v1274_v4 = vmul.f32 %v1065_v43, %v3156_v13 }
 0x1d3   :  { %v1947_v37 = vsel %vm1287_vm2, %v1936_v10, 0.0  ;;  %v1929_v35 = vmul.f32 %v1915_v31, %v1473_v46  ;;  %v1963_v10 = vstv %s1962_s22 }
 0x1d4   :  { %v1948_v28 = vadd.f32 %v1947_v37, %v1946_v18  ;;  %v1503_v7 = vsel %vm1287_vm2, %v1283_v49, 0.0  ;;  %v1532_v25 = vsel %vm1287_vm2, %v1274_v4, 0.0 }
 0x1d5   :  { %v1937_v8 = vmul.f32 %v1929_v35, %v3270_v20  ;;  %v1504_v1 = vadd.f32 %v1503_v7, %v1502_v44  ;;  %v875_v61 = vpop.permute.xlu1 %874  ;;  %v1115_v29 = vpop.permute.xlu0 %1114  ;;  %v1533_v26 = vadd.f32 %v1532_v25, %v1531_v52 }
 0x1d6   :  { %v1236_v56 = vmul.f32 %v875_v61, %v3039_v39  ;;  %v1284_v38 = vmul.f32 %v1115_v29, %v3175_v62 }
 0x1d7   :  { %v1949_v57 = vsel %vm1287_vm2, %v1937_v8, 0.0  ;;  %v1930_v48 = vmul.f32 %v1919_v51, %v1504_v1 }
 0x1d8   :  { %v1950_v53 = vadd.f32 %v1949_v57, %v1948_v28  ;;  %v1534_v55 = vsel %vm1287_vm2, %v1284_v38, 0.0  ;;  %v1587_v36 = vsel %vm1567_vm3, %v1236_v56, 0.0 }
 0x1d9   :  { %v1938_v60 = vmul.f32 %v1930_v48, %v3270_v20  ;;  %v1535_v17 = vadd.f32 %v1534_v55, %v1533_v26  ;;  %v925_v6 = vpop.permute.xlu0 %924  ;;  %v975_v18 = vpop.permute.xlu1 %974  ;;  %v1588_v47 = vadd.f32 %v1587_v36, %v3053_v54 }
 0x1da   :  { %v1246_v39 = vmul.f32 %v925_v6, %v3132_v3  ;;  %v1256_v63 = vmul.f32 %v975_v18, %v3118_v24 }
 0x1db   :  { %v1951_v16 = vsel %vm1287_vm2, %v1938_v60, 0.0  ;;  %v1931_v9 = vmul.f32 %v1923_v19, %v1535_v17 }
 0x1dc   :  { %v1952_v40 = vadd.f32 %v1951_v16, %v1950_v53  ;;  %v1589_v21 = vsel %vm1567_vm3, %v1246_v39, 0.0  ;;  %v1591_v3 = vsel %vm1567_vm3, %v1256_v63, 0.0 }
 0x1dd   :  { %v1939_v5 = vmul.f32 %v1931_v9, %v3270_v20  ;;  %v1025_v23 = vpop.permute.xlu0 %1024  ;;  %v1590_v2 = vadd.f32 %v1589_v21, %v1588_v47  ;;  %v1075_v12 = vpop.permute.xlu1 %1074 }
 0x1de   :  { %v1266_v22 = vmul.f32 %v1025_v23, %v3161_v33  ;;  %v1276_v20 = vmul.f32 %v1075_v12, %v3156_v13 }
 0x1df   :  { %v1953_v0 = vsel %vm1287_vm2, %v1939_v5, 0.0  ;;  %v1592_v45 = vadd.f32 %v1591_v3, %v1590_v2 }
 0x1e0   :  { %v1954_v41 = vadd.f32 %v1953_v0, %v1952_v40  ;;  %v1593_v54 = vsel %vm1567_vm3, %v1266_v22, 0.0  ;;  %v1595_v42 = vsel %vm1567_vm3, %v1276_v20, 0.0 }
 0x1e1   :  { %v1125_v11 = vpop.permute.xlu0 %1124  ;;  %v1594_v15 = vadd.f32 %v1593_v54, %v1592_v45 }
 0x1e2   :  { %v1955_v32 = vrot.slane %v1954_v41, 4  ;;  %v1286_v33 = vmul.f32 %v1125_v11, %v3175_v62 }
 0x1e3   :  { %v1596_v14 = vadd.f32 %v1595_v42, %v1594_v15 }
 0x1e4   :  { %v1956_v27 = vadd.f32 %v1955_v32, %v1954_v41  ;;  %v1597_v46 = vsel %vm1567_vm3, %v1286_v33, 0.0  ;;  %vm2013_vm3 = vcmask 57344  }
 0x1e5   :  { %v1598_v43 = vadd.f32 %v1597_v46, %v1596_v14 }
 0x1e6   :  { %v1957_v24 = vrot.slane %v1956_v27, 2 }
 0x1e7   :  { %v1968_v4 = vrot.slane %v1598_v43, 1 }
 0x1e8   :  { %v1958_v31 = vadd.f32 %v1957_v24, %v1956_v27 }
 0x1ea   :  { %v1959_v30 = vrot.slane %v1958_v31, 1 }
 0x1ec   :  { %v1960_v58 = vadd.f32 %v1959_v30, %v1958_v31 }
 0x1ee   :  { %v1964_v59 = vsub.f32 %v1963_v10, %v1960_v58 }
 0x1f0   :  { %v1965_v13 = vmin.f32 %v1960_v58, %v1964_v59 }
 0x1f2   :  { %v1966_v49 = vsub.f32 %v1965_v13, %v1598_v43 }
 0x1f4   :  { %v1970_v34 = vmul.f32 %v1968_v4, %v1966_v49 }
 0x1f6   :  { %v1971_v37 = vmax.f32 %v1970_v34, -5.0 }
 0x1f8   :  { %v1972_v35 = vmin.f32 %v1971_v37, 0.0 }
 0x1fa   :  { %v1973_v44 = vsub.f32 0.0, %v1972_v35 }
 0x1fc   :  { %v1974_v28 = vmul.f32 0.70710677, %v1973_v44 }
 0x1fe   :  { %v1975_v62 = vand.u32 2147483647, %v1974_v28  ;;  %v1998_v19 = vsub.f32 0.0, %v1974_v28  ;;  %vm2004_vm2 = vcmp.ge.f32.partialorder %v1974_v28, 0.0 }
 0x200   :  { %v1976_v7 = vmul.f32 0.5, %v1975_v62  ;;  %v1999_v39 = vmul.f32 %v1998_v19, %v1974_v28 }
 0x202   :  { %v1977_v25 = vadd.f32 1.0, %v1976_v7 }
 0x204   :  { %2087 = vrcp.f32 %v1977_v25 }
 0x20e   :  { %v2088_v50 = vpop.eup %2087 }
 0x20f   :  { %v1980_v52 = vmul.f32 0.17087276, %v2088_v50 }
 0x211   :  { %v1981_v8 = vadd.f32 -0.82215226, %v1980_v52 }
 0x213   :  { %v1982_v1 = vmul.f32 %v2088_v50, %v1981_v8 }
 0x215   :  { %v1983_v51 = vadd.f32 1.4885159, %v1982_v1 }
 0x217   :  { %v1984_v61 = vmul.f32 %v2088_v50, %v1983_v51 }
 0x219   :  { %v1985_v29 = vadd.f32 -1.135204, %v1984_v61 }
 0x21b   :  { %v1986_v56 = vmul.f32 %v2088_v50, %v1985_v29 }
 0x21d   :  { %v1987_v38 = vadd.f32 0.27886808, %v1986_v56 }
 0x21f   :  { %v1988_v57 = vmul.f32 %v2088_v50, %v1987_v38 }
 0x221   :  { %v1989_v48 = vadd.f32 -0.18628806, %v1988_v57 }
 0x223   :  { %v1990_v26 = vmul.f32 %v2088_v50, %v1989_v48 }
 0x225   :  { %v1991_v53 = vadd.f32 0.09678418, %v1990_v26 }
 0x227   :  { %v1992_v55 = vmul.f32 %v2088_v50, %v1991_v53 }
 0x229   :  { %v1993_v60 = vadd.f32 0.37409195, %v1992_v55 }
 0x22b   :  { %v1994_v36 = vmul.f32 %v2088_v50, %v1993_v60 }
 0x22d   :  { %v1995_v17 = vadd.f32 1.0000237, %v1994_v36 }
 0x22f   :  { %v1996_v6 = vmul.f32 %v2088_v50, %v1995_v17 }
 0x231   :  { %v1997_v18 = vadd.f32 -1.2655122, %v1996_v6 }
 0x233   :  { %v2000_v16 = vadd.f32 %v1999_v39, %v1997_v18 }
 0x235   :  { %v2001_v9 = vmul.f32 1.442695, %v2000_v16 }
 0x237   :  { %2089 = vpow2.f32 %v2001_v9 }
 0x241   :  { %v2090_v40 = vpop.eup %2089 }
 0x242   :  { %v2003_v47 = vmul.f32 %v2090_v40, %v2088_v50 }
 0x244   :  { %v2005_v21 = vsub.f32 2.0, %v2003_v47 }
 0x246   :  { %v2006_v5 = vsel %vm2004_vm2, %v2003_v47, %v2005_v21 }
 0x247   :  { %v2007_v63 = vmul.f32 0.5, %v2006_v5 }
 0x249   :  { %v2008_v23 = vmul.f32 2.0, %v2007_v63 }
 0x24b   :  { %v2009_v2 = vadd.f32 1e-12, %v2008_v23 }
 0x24d   :  { %2091 = vlog2.f32 %v2009_v2 }
 0x257   :  { %v2092_v0 = vpop.eup %2091 }
 0x258   :  { %v2011_v22 = vmul.f32 0.6931472, %v2092_v0 }
 0x25a   :  { %v2012_v41 = vsub.f32 0.0, %v2011_v22 }
 0x25c   :  { %2014 = vst.msk [vmem:[#allocation3] sm:$0x1] %vm2013_vm3, %v2012_v41 }
 0x25d   :  { %2105 = shalt.err (!%p2102_p4)
}
 0x25e   :  { %s2106_s28 = scalar_lea.hbm %s3422_s5, 16 }
 0x25f   :  { %p2107_p5 = scmp.ne.s32.totalorder %s3422_s5, %s2106_s28  ;;  %p2110_p6 = scmp.lt.u32.totalorder %s2106_s28, %s3422_s5 }
 0x261   :  { %p2112_p7 = pnand %p2110_p6, %p2107_p5 }
 0x263   :  { %2115 = shalt.err (!%p2112_p7)
}
 0x264   :  { %2024 = dma.vmem_to_hbm [thread:$0]  %s2022_s23, 16, %s3422_s5, [#allocation4]  }
 0x265   :  { %2116 = dma.done.wait [#allocation4], 16  }
 0x266   :  { %2117 = vsyncadd [#allocation4], 4294967280 }
 0x267   :  { %2028 = vsyncpa [#allocation4], 1 }

</bundles_post_ra>
